<compile_context>
chip_gen: v7x
topology: tpu7x:2x2x1
jax: 0.10.0
libtpu: 0.0.40
codegen_flags: <defaults>
</compile_context>

<pallas_src>
import jax
import jax.numpy as jnp
from jax import lax
from jax.experimental import pallas as pl
from jax.experimental.pallas import tpu as pltpu

INPUT_SIZE = 8      # input_size
HIDDEN = 32         # hidden_size (divisible by num_heads=8)
NUM_LAYERS = 2
NUM_HEADS = 8
HEAD_DIM = HIDDEN // NUM_HEADS
BATCH = 2
SEQ = 8

# ----------------------------------------------------------------------------
# Parameter slab layout: every tensor lives at [row_off : row_off+rows, 0:cols]
# of a single (SLAB_ROWS, 128) f32 slab.  Row offsets are 8-aligned so every
# in-kernel view starts on a sublane-tile boundary.
# ----------------------------------------------------------------------------
_SLAB_LAYOUT = [
    ("wih0",  INPUT_SIZE,  4 * HIDDEN),   # (8, 128)
    ("whh0",  HIDDEN,      4 * HIDDEN),   # (32, 128)
    ("b0",    1,           4 * HIDDEN),
    ("w1cat", 2 * HIDDEN,  4 * HIDDEN),   # [w_ih1; w_hh1] -> (64, 128)
    ("b1",    1,           4 * HIDDEN),
    ("wq",    HIDDEN,      HIDDEN),
    ("bq",    1,           HIDDEN),
    ("wkv",   HIDDEN,      2 * HIDDEN),   # [wk | wv]
    ("bkv",   1,           2 * HIDDEN),
    ("wo",    HIDDEN,      HIDDEN),
    ("bo",    1,           HIDDEN),
    ("gsum",  HIDDEN,      NUM_HEADS),    # lane -> head sum matrix
    ("gexp",  NUM_HEADS,   HIDDEN),       # head -> lane expand matrix
    ("w1",    HIDDEN,      HIDDEN // 2),
    ("b1h",   1,           HIDDEN // 2),
    ("w2",    HIDDEN // 2, HIDDEN // 4),
    ("b2h",   1,           HIDDEN // 4),
    ("w3",    HIDDEN // 4, 3),            # [price | vol | drift] heads fused
    ("b3h",   1,           3),
]

def _round8(n):
    return (n + 7) // 8 * 8

_SLAB_OFFSETS = {}
_off = 0
for _name, _r, _c in _SLAB_LAYOUT:
    _SLAB_OFFSETS[_name] = (_off, _r, _c)
    _off += _round8(_r)
_SLAB_ROWS = _off                 # 360
_SLAB_COLS = 4 * HIDDEN           # 128


def _view(slab_ref, name):
    """Static slab slice -> single load of that weight (zero-cost addressing)."""
    off, r, c = _SLAB_OFFSETS[name]
    return slab_ref[off:off + r, 0:c]


# ----------------------------------------------------------------------------
# Fully fused forward kernel.
#   x_ref    : (T*B, I)  time-major flattened input (row = t*B + b)
#   slab_ref : (SLAB_ROWS, 128) packed weights
#   out_ref  : (B, 3)    [price | vol | drift] (nonlinearities applied)
#   seq1_ref : scratch (T*B, H) layer-1 hidden states, time-major
# ----------------------------------------------------------------------------
def _fused_forward_kernel(x_ref, slab_ref, out_ref, seq1_ref):
    f32 = jnp.float32
    T, B, H = SEQ, BATCH, HIDDEN

    # Hoist all weight loads (single slab already resident in VMEM).
    wih0 = _view(slab_ref, "wih0")
    whh0 = _view(slab_ref, "whh0")
    b0 = _view(slab_ref, "b0")
    w1cat = _view(slab_ref, "w1cat")
    b1 = _view(slab_ref, "b1")

    # Layer-0 input projection: one merged matmul, bias folded in, fully off
    # the serial recurrence chain.
    pre0 = jnp.dot(x_ref[...], wih0, preferred_element_type=f32) + b0   # (T*B, 4H)

    def lstm_cell(gates, c):
        # PyTorch gate order i, f, g, o.  One full-vreg sigmoid + one full-vreg
        # tanh on the (B, 4H) = (2, 128) gates vreg (EUP), gate pieces picked
        # by static lane slices.
        sig = jax.nn.sigmoid(gates)
        tnh = jnp.tanh(gates)
        i_g = sig[:, 0 * H:1 * H]
        f_g = sig[:, 1 * H:2 * H]
        g_g = tnh[:, 2 * H:3 * H]
        o_g = sig[:, 3 * H:4 * H]
        c_new = f_g * c + i_g * g_g
        h_new = o_g * jnp.tanh(c_new)
        return h_new, c_new

    # Both LSTM layers in one fully-unrolled wavefront loop (T static & tiny).
    h0 = jnp.zeros((B, H), f32)
    c0 = jnp.zeros((B, H), f32)
    h1 = jnp.zeros((B, H), f32)
    c1 = jnp.zeros((B, H), f32)
    for t in range(T):                                        # static unroll
        gates0 = pre0[t * B:(t + 1) * B, :] + jnp.dot(
            h0, whh0, preferred_element_type=f32)
        h0, c0 = lstm_cell(gates0, c0)

        # Fused layer-1 matmul: [h0 | h1_prev] @ [w_ih1 ; w_hh1]  (1 MXU round)
        gates1 = jnp.dot(jnp.concatenate([h0, h1], axis=1), w1cat,
                         preferred_element_type=f32) + b1
        h1, c1 = lstm_cell(gates1, c1)

        # One (B, H) store per step, time-major (row = t*B + b); not on the
        # serial h-chain.
        seq1_ref[t * B:(t + 1) * B, :] = h1

    # ---------------- attention: last query position only -------------------
    wq = _view(slab_ref, "wq")
    bq = _view(slab_ref, "bq")
    wkv = _view(slab_ref, "wkv")
    bkv = _view(slab_ref, "bkv")
    wo = _view(slab_ref, "wo")
    bo = _view(slab_ref, "bo")
    gsum = _view(slab_ref, "gsum")     # (H, NH)
    gexp = _view(slab_ref, "gexp")     # (NH, H)

    scale = 1.0 / float(HEAD_DIM) ** 0.5
    q_all = (jnp.dot(h1, wq, preferred_element_type=f32) + bq) * scale  # (B, H)

    seq1 = seq1_ref[...]                                                # (T*B, H)
    kv = jnp.dot(seq1, wkv, preferred_element_type=f32) + bkv           # (T*B, 2H)
    k_all = kv[:, :H]
    v_all = kv[:, H:]

    # Broadcast each batch's query onto its (time-major interleaved) rows.
    row_mod_h = lax.broadcasted_iota(jnp.int32, (T * B, H), 0) % B
    q_rows = jnp.zeros((T * B, H), f32)
    for b in range(B):                                        # static, B = 2
        q_rows = jnp.where(row_mod_h == b, q_all[b:b + 1, :], q_rows)

    # All heads at once: scores[row, h] = q_h(b(row)) . k_h(row)
    scores = jnp.dot(k_all * q_rows, gsum, preferred_element_type=f32)  # (T*B, NH)

    row_mod_s = lax.broadcasted_iota(jnp.int32, (T * B, NUM_HEADS), 0) % B
    batch_row = lax.broadcasted_iota(jnp.int32, (B, H), 0)
    ctx = jnp.zeros((B, H), f32)
    for b in range(B):                                        # static, B = 2
        mask = row_mod_s == b
        sc = jnp.where(mask, scores, -1e30)
        m = jnp.max(sc, axis=0, keepdims=True)                # (1, NH)
        p = jnp.where(mask, jnp.exp(sc - m), 0.0)
        denom = jnp.sum(p, axis=0, keepdims=True)
        p = p * (1.0 / denom)                                 # exact reciprocal
        p_lanes = jnp.dot(p, gexp, preferred_element_type=f32)          # (T*B, H)
        ctx_b = jnp.sum(p_lanes * v_all, axis=0, keepdims=True)         # (1, H)
        ctx = jnp.where(batch_row == b, ctx_b, ctx)           # registers only

    attn_last = jnp.dot(ctx, wo, preferred_element_type=f32) + bo       # (B, H)

    # ---------------- feature extractor + fused prediction heads ------------
    w1 = _view(slab_ref, "w1")
    b1h = _view(slab_ref, "b1h")
    w2 = _view(slab_ref, "w2")
    b2h = _view(slab_ref, "b2h")
    w3 = _view(slab_ref, "w3")
    b3h = _view(slab_ref, "b3h")

    hf1 = jnp.maximum(
        jnp.dot(attn_last, w1, preferred_element_type=f32) + b1h, 0.0)
    hf2 = jnp.maximum(
        jnp.dot(hf1, w2, preferred_element_type=f32) + b2h, 0.0)
    raw = jnp.dot(hf2, w3, preferred_element_type=f32) + b3h            # (B, 3)
    # column 0: price (linear), 1: sigmoid * 0.5, 2: tanh * 0.3
    col = lax.broadcasted_iota(jnp.int32, raw.shape, 1)
    out_ref[...] = jnp.where(
        col == 0, raw,
        jnp.where(col == 1, jax.nn.sigmoid(raw) * 0.5, jnp.tanh(raw) * 0.3))


# ----------------------------------------------------------------------------
# One pallas_call for the whole forward pass.  Only per-call glue left in the
# jitted wrapper is the batch-first -> time-major reshape of x.
# ----------------------------------------------------------------------------
_COST = pl.CostEstimate(flops=530_000, transcendentals=9_500,
                        bytes_accessed=190_000)


@jax.jit
def forward(x, slab):
    x_flat = jnp.transpose(x, (1, 0, 2)).reshape(SEQ * BATCH, INPUT_SIZE)
    out = pl.pallas_call(
        _fused_forward_kernel,
        out_shape=jax.ShapeDtypeStruct((BATCH, 3), jnp.float32),
        scratch_shapes=[pltpu.VMEM((SEQ * BATCH, HIDDEN), jnp.float32)],
        compiler_params=pltpu.CompilerParams(vmem_limit_bytes=4 * 1024 * 1024),
        cost_estimate=_COST,
    )(x_flat, slab)
    return out[:, 0:1], out[:, 1:2], out[:, 2:3]


# ----------------------------------------------------------------------------
# Parameter init (synthetic weights; shapes per the nn.Module, pre-transposed
# to x @ W form, LSTM biases b_ih + b_hh folded) and one-time slab packing.
# ----------------------------------------------------------------------------
def init_params(key):
    ks = iter(jax.random.split(key, 32))

    def w(shape, scale=0.1):
        return jax.random.normal(next(ks), shape, jnp.float32) * scale

    p = {}
    in_sizes = [INPUT_SIZE, HIDDEN]
    for l in range(NUM_LAYERS):
        p[f"w_ih{l}"] = w((in_sizes[l], 4 * HIDDEN))
        p[f"w_hh{l}"] = w((HIDDEN, 4 * HIDDEN))
        p[f"b_lstm{l}"] = w((1, 4 * HIDDEN), 0.01)
    for name in ("wq", "wk", "wv", "wo"):
        p[name] = w((HIDDEN, HIDDEN))
    for name in ("bq", "bk", "bv", "bo"):
        p[name] = w((1, HIDDEN), 0.01)
    p["w1"] = w((HIDDEN, HIDDEN // 2)); p["b1"] = w((1, HIDDEN // 2), 0.01)
    p["w2"] = w((HIDDEN // 2, HIDDEN // 4)); p["b2"] = w((1, HIDDEN // 4), 0.01)
    p["wp"] = w((HIDDEN // 4, 1)); p["bp"] = w((1, 1), 0.01)
    p["wv_head"] = w((HIDDEN // 4, 1)); p["bv_head"] = w((1, 1), 0.01)
    p["wd"] = w((HIDDEN // 4, 1)); p["bd"] = w((1, 1), 0.01)
    return p


def pack_params(p):
    """Build the single weight slab + helper matrices ONCE at setup time."""
    gsum = (jnp.arange(HIDDEN)[:, None] // HEAD_DIM
            == jnp.arange(NUM_HEADS)[None, :]).astype(jnp.float32)     # (H, NH)
    entries = {
        "wih0": p["w_ih0"], "whh0": p["w_hh0"], "b0": p["b_lstm0"],
        "w1cat": jnp.concatenate([p["w_ih1"], p["w_hh1"]], axis=0),
        "b1": p["b_lstm1"],
        "wq": p["wq"], "bq": p["bq"],
        "wkv": jnp.concatenate([p["wk"], p["wv"]], axis=1),
        "bkv": jnp.concatenate([p["bk"], p["bv"]], axis=1),
        "wo": p["wo"], "bo": p["bo"],
        "gsum": gsum, "gexp": gsum.T,
        "w1": p["w1"], "b1h": p["b1"],
        "w2": p["w2"], "b2h": p["b2"],
        "w3": jnp.concatenate([p["wp"], p["wv_head"], p["wd"]], axis=1),
        "b3h": jnp.concatenate([p["bp"], p["bv_head"], p["bd"]], axis=1),
    }
    slab = jnp.zeros((_SLAB_ROWS, _SLAB_COLS), jnp.float32)
    for name, (off, r, c) in _SLAB_OFFSETS.items():
        slab = slab.at[off:off + r, 0:c].set(entries[name])
    return slab


# ----------------------------------------------------------------------------
# Pure-JAX reference (full attention, per-head loop) used to validate the
# fused Pallas kernel.
# ----------------------------------------------------------------------------
def reference_forward(x, p):
    B, T, _ = x.shape
    seq = x
    for l in range(NUM_LAYERS):
        w_ih, w_hh, b = p[f"w_ih{l}"], p[f"w_hh{l}"], p[f"b_lstm{l}"]
        H = w_hh.shape[0]

        def step(carry, x_t):
            h, c = carry
            gates = x_t @ w_ih + h @ w_hh + b
            i = jax.nn.sigmoid(gates[:, :H])
            f = jax.nn.sigmoid(gates[:, H:2 * H])
            g = jnp.tanh(gates[:, 2 * H:3 * H])
            o = jax.nn.sigmoid(gates[:, 3 * H:])
            c = f * c + i * g
            h = o * jnp.tanh(c)
            return (h, c), h

        (_, _), ys = lax.scan(step, (jnp.zeros((B, H)), jnp.zeros((B, H))),
                              jnp.transpose(seq, (1, 0, 2)))
        seq = jnp.transpose(ys, (1, 0, 2))

    q = seq @ p["wq"] + p["bq"]
    k = seq @ p["wk"] + p["bk"]
    v = seq @ p["wv"] + p["bv"]
    qh = q.reshape(B, T, NUM_HEADS, HEAD_DIM).transpose(0, 2, 1, 3)
    kh = k.reshape(B, T, NUM_HEADS, HEAD_DIM).transpose(0, 2, 1, 3)
    vh = v.reshape(B, T, NUM_HEADS, HEAD_DIM).transpose(0, 2, 1, 3)
    scores = jnp.einsum('bhqd,bhkd->bhqk', qh, kh) / jnp.sqrt(float(HEAD_DIM))
    attnp = jax.nn.softmax(scores, axis=-1)
    ctx = jnp.einsum('bhqk,bhkd->bhqd', attnp, vh)
    ctx = ctx.transpose(0, 2, 1, 3).reshape(B, T, HIDDEN)
    attn_out = ctx @ p["wo"] + p["bo"]

    last = attn_out[:, -1, :]
    h1 = jax.nn.relu(last @ p["w1"] + p["b1"])
    h2 = jax.nn.relu(h1 @ p["w2"] + p["b2"])
    price = h2 @ p["wp"] + p["bp"]
    vol = jax.nn.sigmoid(h2 @ p["wv_head"] + p["bv_head"]) * 0.5
    drift = jnp.tanh(h2 @ p["wd"] + p["bd"]) * 0.3
    return price, vol, drift


if __name__ == "__main__":
    key = jax.random.PRNGKey(0)
    k_x, k_p = jax.random.split(key)
    x = jax.random.normal(k_x, (BATCH, SEQ, INPUT_SIZE), jnp.float32)
    params = init_params(k_p)
    slab = pack_params(params)          # one-time setup (single-DMA weight slab)

    price, vol, drift = forward(x, slab)
    jax.block_until_ready((price, vol, drift))

    rp, rv, rd = reference_forward(x, params)
    assert price.shape == (BATCH, 1) and vol.shape == (BATCH, 1) and drift.shape == (BATCH, 1)
    assert jnp.allclose(price, rp, atol=1e-3, rtol=1e-3), (price, rp)
    assert jnp.allclose(vol, rv, atol=1e-3, rtol=1e-3), (vol, rv)
    assert jnp.allclose(drift, rd, atol=1e-3, rtol=1e-3), (drift, rd)

    print("KERNEL_OK")
</pallas_src>

<mosaic_0001>
module attributes {stable_mosaic.version = 11 : i64} {
  func.func @_fused_forward_kernel(%arg0: memref<16x8xf32, #tpu.memory_space<vmem>>, %arg1: memref<360x128xf32, #tpu.memory_space<vmem>>, %arg2: memref<2x3xf32, #tpu.memory_space<vmem>>, %arg3: memref<16x32xf32, #tpu.memory_space<vmem>>) attributes {dimension_semantics = [], scalar_prefetch = 0 : i64, scratch_operands = 1 : i64, tpu.core_type = #tpu.core_type<tc>} {
    %c0 = arith.constant 0 : index
    %c0_0 = arith.constant 0 : index
    %0 = vector.load %arg1[%c0, %c0_0] : memref<360x128xf32, #tpu.memory_space<vmem>>, vector<8x128xf32>
    %c8 = arith.constant 8 : index
    %c0_1 = arith.constant 0 : index
    %1 = vector.load %arg1[%c8, %c0_1] : memref<360x128xf32, #tpu.memory_space<vmem>>, vector<32x128xf32>
    %c40 = arith.constant 40 : index
    %c0_2 = arith.constant 0 : index
    %2 = vector.load %arg1[%c40, %c0_2] : memref<360x128xf32, #tpu.memory_space<vmem>>, vector<1x128xf32>
    %c48 = arith.constant 48 : index
    %c0_3 = arith.constant 0 : index
    %3 = vector.load %arg1[%c48, %c0_3] : memref<360x128xf32, #tpu.memory_space<vmem>>, vector<64x128xf32>
    %c112 = arith.constant 112 : index
    %c0_4 = arith.constant 0 : index
    %4 = vector.load %arg1[%c112, %c0_4] : memref<360x128xf32, #tpu.memory_space<vmem>>, vector<1x128xf32>
    %c0_5 = arith.constant 0 : index
    %c0_6 = arith.constant 0 : index
    %5 = vector.load %arg0[%c0_5, %c0_6] : memref<16x8xf32, #tpu.memory_space<vmem>>, vector<16x8xf32>
    %cst = arith.constant dense<0.000000e+00> : vector<16x128xf32>
    %6 = tpu.matmul %5, %0, %cst {dimension_numbers = #tpu.dot_dimension_numbers<[1], [0], [0], [1], [0, 0, 1, 1], [], []>} : vector<16x8xf32>, vector<8x128xf32>, vector<16x128xf32> -> vector<16x128xf32>
    %7 = vector.broadcast %2 : vector<1x128xf32> to vector<16x128xf32>
    %8 = arith.addf %6, %7 : vector<16x128xf32>
    %cst_7 = arith.constant 0.000000e+00 : f32
    %9 = vector.broadcast %cst_7 : f32 to vector<2x32xf32>
    %cst_8 = arith.constant 0.000000e+00 : f32
    %10 = vector.broadcast %cst_8 : f32 to vector<2x32xf32>
    %cst_9 = arith.constant 0.000000e+00 : f32
    %11 = vector.broadcast %cst_9 : f32 to vector<2x32xf32>
    %cst_10 = arith.constant 0.000000e+00 : f32
    %12 = vector.broadcast %cst_10 : f32 to vector<2x32xf32>
    %13 = vector.extract_strided_slice %8 {offsets = [0, 0], sizes = [2, 128], strides = [1, 1]} : vector<16x128xf32> to vector<2x128xf32>
    %cst_11 = arith.constant dense<0.000000e+00> : vector<2x128xf32>
    %14 = tpu.matmul %9, %1, %cst_11 {dimension_numbers = #tpu.dot_dimension_numbers<[1], [0], [0], [1], [0, 0, 1, 1], [], []>} : vector<2x32xf32>, vector<32x128xf32>, vector<2x128xf32> -> vector<2x128xf32>
    %15 = arith.addf %13, %14 : vector<2x128xf32>
    %16 = arith.negf %15 : vector<2x128xf32>
    %17 = math.exp %16 : vector<2x128xf32>
    %cst_12 = arith.constant 1.000000e+00 : f32
    %18 = vector.broadcast %cst_12 : f32 to vector<2x128xf32>
    %19 = arith.addf %18, %17 : vector<2x128xf32>
    %20 = arith.divf %18, %19 : vector<2x128xf32>
    %21 = math.tanh %15 : vector<2x128xf32>
    %22 = vector.extract_strided_slice %20 {offsets = [0, 0], sizes = [2, 32], strides = [1, 1]} : vector<2x128xf32> to vector<2x32xf32>
    %23 = vector.extract_strided_slice %20 {offsets = [0, 32], sizes = [2, 32], strides = [1, 1]} : vector<2x128xf32> to vector<2x32xf32>
    %24 = vector.extract_strided_slice %21 {offsets = [0, 64], sizes = [2, 32], strides = [1, 1]} : vector<2x128xf32> to vector<2x32xf32>
    %25 = vector.extract_strided_slice %20 {offsets = [0, 96], sizes = [2, 32], strides = [1, 1]} : vector<2x128xf32> to vector<2x32xf32>
    %26 = arith.mulf %23, %10 : vector<2x32xf32>
    %27 = arith.mulf %22, %24 : vector<2x32xf32>
    %28 = arith.addf %26, %27 : vector<2x32xf32>
    %29 = math.tanh %28 : vector<2x32xf32>
    %30 = arith.mulf %25, %29 : vector<2x32xf32>
    %31 = tpu.concatenate %30, %11 in 1 : vector<2x32xf32>, vector<2x32xf32> -> vector<2x64xf32>
    %cst_13 = arith.constant dense<0.000000e+00> : vector<2x128xf32>
    %32 = tpu.matmul %31, %3, %cst_13 {dimension_numbers = #tpu.dot_dimension_numbers<[1], [0], [0], [1], [0, 0, 1, 1], [], []>} : vector<2x64xf32>, vector<64x128xf32>, vector<2x128xf32> -> vector<2x128xf32>
    %33 = vector.broadcast %4 : vector<1x128xf32> to vector<2x128xf32>
    %34 = arith.addf %32, %33 : vector<2x128xf32>
    %35 = arith.negf %34 : vector<2x128xf32>
    %36 = math.exp %35 : vector<2x128xf32>
    %cst_14 = arith.constant 1.000000e+00 : f32
    %37 = vector.broadcast %cst_14 : f32 to vector<2x128xf32>
    %38 = arith.addf %37, %36 : vector<2x128xf32>
    %39 = arith.divf %37, %38 : vector<2x128xf32>
    %40 = math.tanh %34 : vector<2x128xf32>
    %41 = vector.extract_strided_slice %39 {offsets = [0, 0], sizes = [2, 32], strides = [1, 1]} : vector<2x128xf32> to vector<2x32xf32>
    %42 = vector.extract_strided_slice %39 {offsets = [0, 32], sizes = [2, 32], strides = [1, 1]} : vector<2x128xf32> to vector<2x32xf32>
    %43 = vector.extract_strided_slice %40 {offsets = [0, 64], sizes = [2, 32], strides = [1, 1]} : vector<2x128xf32> to vector<2x32xf32>
    %44 = vector.extract_strided_slice %39 {offsets = [0, 96], sizes = [2, 32], strides = [1, 1]} : vector<2x128xf32> to vector<2x32xf32>
    %45 = arith.mulf %42, %12 : vector<2x32xf32>
    %46 = arith.mulf %41, %43 : vector<2x32xf32>
    %47 = arith.addf %45, %46 : vector<2x32xf32>
    %48 = math.tanh %47 : vector<2x32xf32>
    %49 = arith.mulf %44, %48 : vector<2x32xf32>
    %c0_15 = arith.constant 0 : index
    %c0_16 = arith.constant 0 : index
    %50 = vector.load %arg3[%c0_15, %c0_16] : memref<16x32xf32, #tpu.memory_space<vmem>>, vector<2x32xf32>
    tpu.vector_store %arg3[%c0_15, %c0_16], %49 {strides = array<i32>} : memref<16x32xf32, #tpu.memory_space<vmem>>, vector<2x32xf32>,
    %51 = vector.extract_strided_slice %8 {offsets = [2, 0], sizes = [2, 128], strides = [1, 1]} : vector<16x128xf32> to vector<2x128xf32>
    %cst_17 = arith.constant dense<0.000000e+00> : vector<2x128xf32>
    %52 = tpu.matmul %30, %1, %cst_17 {dimension_numbers = #tpu.dot_dimension_numbers<[1], [0], [0], [1], [0, 0, 1, 1], [], []>} : vector<2x32xf32>, vector<32x128xf32>, vector<2x128xf32> -> vector<2x128xf32>
    %53 = arith.addf %51, %52 : vector<2x128xf32>
    %54 = arith.negf %53 : vector<2x128xf32>
    %55 = math.exp %54 : vector<2x128xf32>
    %cst_18 = arith.constant 1.000000e+00 : f32
    %56 = vector.broadcast %cst_18 : f32 to vector<2x128xf32>
    %57 = arith.addf %56, %55 : vector<2x128xf32>
    %58 = arith.divf %56, %57 : vector<2x128xf32>
    %59 = math.tanh %53 : vector<2x128xf32>
    %60 = vector.extract_strided_slice %58 {offsets = [0, 0], sizes = [2, 32], strides = [1, 1]} : vector<2x128xf32> to vector<2x32xf32>
    %61 = vector.extract_strided_slice %58 {offsets = [0, 32], sizes = [2, 32], strides = [1, 1]} : vector<2x128xf32> to vector<2x32xf32>
    %62 = vector.extract_strided_slice %59 {offsets = [0, 64], sizes = [2, 32], strides = [1, 1]} : vector<2x128xf32> to vector<2x32xf32>
    %63 = vector.extract_strided_slice %58 {offsets = [0, 96], sizes = [2, 32], strides = [1, 1]} : vector<2x128xf32> to vector<2x32xf32>
    %64 = arith.mulf %61, %28 : vector<2x32xf32>
    %65 = arith.mulf %60, %62 : vector<2x32xf32>
    %66 = arith.addf %64, %65 : vector<2x32xf32>
    %67 = math.tanh %66 : vector<2x32xf32>
    %68 = arith.mulf %63, %67 : vector<2x32xf32>
    %69 = tpu.concatenate %68, %49 in 1 : vector<2x32xf32>, vector<2x32xf32> -> vector<2x64xf32>
    %cst_19 = arith.constant dense<0.000000e+00> : vector<2x128xf32>
    %70 = tpu.matmul %69, %3, %cst_19 {dimension_numbers = #tpu.dot_dimension_numbers<[1], [0], [0], [1], [0, 0, 1, 1], [], []>} : vector<2x64xf32>, vector<64x128xf32>, vector<2x128xf32> -> vector<2x128xf32>
    %71 = vector.broadcast %4 : vector<1x128xf32> to vector<2x128xf32>
    %72 = arith.addf %70, %71 : vector<2x128xf32>
    %73 = arith.negf %72 : vector<2x128xf32>
    %74 = math.exp %73 : vector<2x128xf32>
    %cst_20 = arith.constant 1.000000e+00 : f32
    %75 = vector.broadcast %cst_20 : f32 to vector<2x128xf32>
    %76 = arith.addf %75, %74 : vector<2x128xf32>
    %77 = arith.divf %75, %76 : vector<2x128xf32>
    %78 = math.tanh %72 : vector<2x128xf32>
    %79 = vector.extract_strided_slice %77 {offsets = [0, 0], sizes = [2, 32], strides = [1, 1]} : vector<2x128xf32> to vector<2x32xf32>
    %80 = vector.extract_strided_slice %77 {offsets = [0, 32], sizes = [2, 32], strides = [1, 1]} : vector<2x128xf32> to vector<2x32xf32>
    %81 = vector.extract_strided_slice %78 {offsets = [0, 64], sizes = [2, 32], strides = [1, 1]} : vector<2x128xf32> to vector<2x32xf32>
    %82 = vector.extract_strided_slice %77 {offsets = [0, 96], sizes = [2, 32], strides = [1, 1]} : vector<2x128xf32> to vector<2x32xf32>
    %83 = arith.mulf %80, %47 : vector<2x32xf32>
    %84 = arith.mulf %79, %81 : vector<2x32xf32>
    %85 = arith.addf %83, %84 : vector<2x32xf32>
    %86 = math.tanh %85 : vector<2x32xf32>
    %87 = arith.mulf %82, %86 : vector<2x32xf32>
    %c2 = arith.constant 2 : index
    %c0_21 = arith.constant 0 : index
    %88 = vector.load %arg3[%c2, %c0_21] : memref<16x32xf32, #tpu.memory_space<vmem>>, vector<2x32xf32>
    tpu.vector_store %arg3[%c2, %c0_21], %87 {strides = array<i32>} : memref<16x32xf32, #tpu.memory_space<vmem>>, vector<2x32xf32>,
    %89 = vector.extract_strided_slice %8 {offsets = [4, 0], sizes = [2, 128], strides = [1, 1]} : vector<16x128xf32> to vector<2x128xf32>
    %cst_22 = arith.constant dense<0.000000e+00> : vector<2x128xf32>
    %90 = tpu.matmul %68, %1, %cst_22 {dimension_numbers = #tpu.dot_dimension_numbers<[1], [0], [0], [1], [0, 0, 1, 1], [], []>} : vector<2x32xf32>, vector<32x128xf32>, vector<2x128xf32> -> vector<2x128xf32>
    %91 = arith.addf %89, %90 : vector<2x128xf32>
    %92 = arith.negf %91 : vector<2x128xf32>
    %93 = math.exp %92 : vector<2x128xf32>
    %cst_23 = arith.constant 1.000000e+00 : f32
    %94 = vector.broadcast %cst_23 : f32 to vector<2x128xf32>
    %95 = arith.addf %94, %93 : vector<2x128xf32>
    %96 = arith.divf %94, %95 : vector<2x128xf32>
    %97 = math.tanh %91 : vector<2x128xf32>
    %98 = vector.extract_strided_slice %96 {offsets = [0, 0], sizes = [2, 32], strides = [1, 1]} : vector<2x128xf32> to vector<2x32xf32>
    %99 = vector.extract_strided_slice %96 {offsets = [0, 32], sizes = [2, 32], strides = [1, 1]} : vector<2x128xf32> to vector<2x32xf32>
    %100 = vector.extract_strided_slice %97 {offsets = [0, 64], sizes = [2, 32], strides = [1, 1]} : vector<2x128xf32> to vector<2x32xf32>
    %101 = vector.extract_strided_slice %96 {offsets = [0, 96], sizes = [2, 32], strides = [1, 1]} : vector<2x128xf32> to vector<2x32xf32>
    %102 = arith.mulf %99, %66 : vector<2x32xf32>
    %103 = arith.mulf %98, %100 : vector<2x32xf32>
    %104 = arith.addf %102, %103 : vector<2x32xf32>
    %105 = math.tanh %104 : vector<2x32xf32>
    %106 = arith.mulf %101, %105 : vector<2x32xf32>
    %107 = tpu.concatenate %106, %87 in 1 : vector<2x32xf32>, vector<2x32xf32> -> vector<2x64xf32>
    %cst_24 = arith.constant dense<0.000000e+00> : vector<2x128xf32>
    %108 = tpu.matmul %107, %3, %cst_24 {dimension_numbers = #tpu.dot_dimension_numbers<[1], [0], [0], [1], [0, 0, 1, 1], [], []>} : vector<2x64xf32>, vector<64x128xf32>, vector<2x128xf32> -> vector<2x128xf32>
    %109 = vector.broadcast %4 : vector<1x128xf32> to vector<2x128xf32>
    %110 = arith.addf %108, %109 : vector<2x128xf32>
    %111 = arith.negf %110 : vector<2x128xf32>
    %112 = math.exp %111 : vector<2x128xf32>
    %cst_25 = arith.constant 1.000000e+00 : f32
    %113 = vector.broadcast %cst_25 : f32 to vector<2x128xf32>
    %114 = arith.addf %113, %112 : vector<2x128xf32>
    %115 = arith.divf %113, %114 : vector<2x128xf32>
    %116 = math.tanh %110 : vector<2x128xf32>
    %117 = vector.extract_strided_slice %115 {offsets = [0, 0], sizes = [2, 32], strides = [1, 1]} : vector<2x128xf32> to vector<2x32xf32>
    %118 = vector.extract_strided_slice %115 {offsets = [0, 32], sizes = [2, 32], strides = [1, 1]} : vector<2x128xf32> to vector<2x32xf32>
    %119 = vector.extract_strided_slice %116 {offsets = [0, 64], sizes = [2, 32], strides = [1, 1]} : vector<2x128xf32> to vector<2x32xf32>
    %120 = vector.extract_strided_slice %115 {offsets = [0, 96], sizes = [2, 32], strides = [1, 1]} : vector<2x128xf32> to vector<2x32xf32>
    %121 = arith.mulf %118, %85 : vector<2x32xf32>
    %122 = arith.mulf %117, %119 : vector<2x32xf32>
    %123 = arith.addf %121, %122 : vector<2x32xf32>
    %124 = math.tanh %123 : vector<2x32xf32>
    %125 = arith.mulf %120, %124 : vector<2x32xf32>
    %c4 = arith.constant 4 : index
    %c0_26 = arith.constant 0 : index
    %126 = vector.load %arg3[%c4, %c0_26] : memref<16x32xf32, #tpu.memory_space<vmem>>, vector<2x32xf32>
    tpu.vector_store %arg3[%c4, %c0_26], %125 {strides = array<i32>} : memref<16x32xf32, #tpu.memory_space<vmem>>, vector<2x32xf32>,
    %127 = vector.extract_strided_slice %8 {offsets = [6, 0], sizes = [2, 128], strides = [1, 1]} : vector<16x128xf32> to vector<2x128xf32>
    %cst_27 = arith.constant dense<0.000000e+00> : vector<2x128xf32>
    %128 = tpu.matmul %106, %1, %cst_27 {dimension_numbers = #tpu.dot_dimension_numbers<[1], [0], [0], [1], [0, 0, 1, 1], [], []>} : vector<2x32xf32>, vector<32x128xf32>, vector<2x128xf32> -> vector<2x128xf32>
    %129 = arith.addf %127, %128 : vector<2x128xf32>
    %130 = arith.negf %129 : vector<2x128xf32>
    %131 = math.exp %130 : vector<2x128xf32>
    %cst_28 = arith.constant 1.000000e+00 : f32
    %132 = vector.broadcast %cst_28 : f32 to vector<2x128xf32>
    %133 = arith.addf %132, %131 : vector<2x128xf32>
    %134 = arith.divf %132, %133 : vector<2x128xf32>
    %135 = math.tanh %129 : vector<2x128xf32>
    %136 = vector.extract_strided_slice %134 {offsets = [0, 0], sizes = [2, 32], strides = [1, 1]} : vector<2x128xf32> to vector<2x32xf32>
    %137 = vector.extract_strided_slice %134 {offsets = [0, 32], sizes = [2, 32], strides = [1, 1]} : vector<2x128xf32> to vector<2x32xf32>
    %138 = vector.extract_strided_slice %135 {offsets = [0, 64], sizes = [2, 32], strides = [1, 1]} : vector<2x128xf32> to vector<2x32xf32>
    %139 = vector.extract_strided_slice %134 {offsets = [0, 96], sizes = [2, 32], strides = [1, 1]} : vector<2x128xf32> to vector<2x32xf32>
    %140 = arith.mulf %137, %104 : vector<2x32xf32>
    %141 = arith.mulf %136, %138 : vector<2x32xf32>
    %142 = arith.addf %140, %141 : vector<2x32xf32>
    %143 = math.tanh %142 : vector<2x32xf32>
    %144 = arith.mulf %139, %143 : vector<2x32xf32>
    %145 = tpu.concatenate %144, %125 in 1 : vector<2x32xf32>, vector<2x32xf32> -> vector<2x64xf32>
    %cst_29 = arith.constant dense<0.000000e+00> : vector<2x128xf32>
    %146 = tpu.matmul %145, %3, %cst_29 {dimension_numbers = #tpu.dot_dimension_numbers<[1], [0], [0], [1], [0, 0, 1, 1], [], []>} : vector<2x64xf32>, vector<64x128xf32>, vector<2x128xf32> -> vector<2x128xf32>
    %147 = vector.broadcast %4 : vector<1x128xf32> to vector<2x128xf32>
    %148 = arith.addf %146, %147 : vector<2x128xf32>
    %149 = arith.negf %148 : vector<2x128xf32>
    %150 = math.exp %149 : vector<2x128xf32>
    %cst_30 = arith.constant 1.000000e+00 : f32
    %151 = vector.broadcast %cst_30 : f32 to vector<2x128xf32>
    %152 = arith.addf %151, %150 : vector<2x128xf32>
    %153 = arith.divf %151, %152 : vector<2x128xf32>
    %154 = math.tanh %148 : vector<2x128xf32>
    %155 = vector.extract_strided_slice %153 {offsets = [0, 0], sizes = [2, 32], strides = [1, 1]} : vector<2x128xf32> to vector<2x32xf32>
    %156 = vector.extract_strided_slice %153 {offsets = [0, 32], sizes = [2, 32], strides = [1, 1]} : vector<2x128xf32> to vector<2x32xf32>
    %157 = vector.extract_strided_slice %154 {offsets = [0, 64], sizes = [2, 32], strides = [1, 1]} : vector<2x128xf32> to vector<2x32xf32>
    %158 = vector.extract_strided_slice %153 {offsets = [0, 96], sizes = [2, 32], strides = [1, 1]} : vector<2x128xf32> to vector<2x32xf32>
    %159 = arith.mulf %156, %123 : vector<2x32xf32>
    %160 = arith.mulf %155, %157 : vector<2x32xf32>
    %161 = arith.addf %159, %160 : vector<2x32xf32>
    %162 = math.tanh %161 : vector<2x32xf32>
    %163 = arith.mulf %158, %162 : vector<2x32xf32>
    %c6 = arith.constant 6 : index
    %c0_31 = arith.constant 0 : index
    %164 = vector.load %arg3[%c6, %c0_31] : memref<16x32xf32, #tpu.memory_space<vmem>>, vector<2x32xf32>
    tpu.vector_store %arg3[%c6, %c0_31], %163 {strides = array<i32>} : memref<16x32xf32, #tpu.memory_space<vmem>>, vector<2x32xf32>,
    %165 = vector.extract_strided_slice %8 {offsets = [8, 0], sizes = [2, 128], strides = [1, 1]} : vector<16x128xf32> to vector<2x128xf32>
    %cst_32 = arith.constant dense<0.000000e+00> : vector<2x128xf32>
    %166 = tpu.matmul %144, %1, %cst_32 {dimension_numbers = #tpu.dot_dimension_numbers<[1], [0], [0], [1], [0, 0, 1, 1], [], []>} : vector<2x32xf32>, vector<32x128xf32>, vector<2x128xf32> -> vector<2x128xf32>
    %167 = arith.addf %165, %166 : vector<2x128xf32>
    %168 = arith.negf %167 : vector<2x128xf32>
    %169 = math.exp %168 : vector<2x128xf32>
    %cst_33 = arith.constant 1.000000e+00 : f32
    %170 = vector.broadcast %cst_33 : f32 to vector<2x128xf32>
    %171 = arith.addf %170, %169 : vector<2x128xf32>
    %172 = arith.divf %170, %171 : vector<2x128xf32>
    %173 = math.tanh %167 : vector<2x128xf32>
    %174 = vector.extract_strided_slice %172 {offsets = [0, 0], sizes = [2, 32], strides = [1, 1]} : vector<2x128xf32> to vector<2x32xf32>
    %175 = vector.extract_strided_slice %172 {offsets = [0, 32], sizes = [2, 32], strides = [1, 1]} : vector<2x128xf32> to vector<2x32xf32>
    %176 = vector.extract_strided_slice %173 {offsets = [0, 64], sizes = [2, 32], strides = [1, 1]} : vector<2x128xf32> to vector<2x32xf32>
    %177 = vector.extract_strided_slice %172 {offsets = [0, 96], sizes = [2, 32], strides = [1, 1]} : vector<2x128xf32> to vector<2x32xf32>
    %178 = arith.mulf %175, %142 : vector<2x32xf32>
    %179 = arith.mulf %174, %176 : vector<2x32xf32>
    %180 = arith.addf %178, %179 : vector<2x32xf32>
    %181 = math.tanh %180 : vector<2x32xf32>
    %182 = arith.mulf %177, %181 : vector<2x32xf32>
    %183 = tpu.concatenate %182, %163 in 1 : vector<2x32xf32>, vector<2x32xf32> -> vector<2x64xf32>
    %cst_34 = arith.constant dense<0.000000e+00> : vector<2x128xf32>
    %184 = tpu.matmul %183, %3, %cst_34 {dimension_numbers = #tpu.dot_dimension_numbers<[1], [0], [0], [1], [0, 0, 1, 1], [], []>} : vector<2x64xf32>, vector<64x128xf32>, vector<2x128xf32> -> vector<2x128xf32>
    %185 = vector.broadcast %4 : vector<1x128xf32> to vector<2x128xf32>
    %186 = arith.addf %184, %185 : vector<2x128xf32>
    %187 = arith.negf %186 : vector<2x128xf32>
    %188 = math.exp %187 : vector<2x128xf32>
    %cst_35 = arith.constant 1.000000e+00 : f32
    %189 = vector.broadcast %cst_35 : f32 to vector<2x128xf32>
    %190 = arith.addf %189, %188 : vector<2x128xf32>
    %191 = arith.divf %189, %190 : vector<2x128xf32>
    %192 = math.tanh %186 : vector<2x128xf32>
    %193 = vector.extract_strided_slice %191 {offsets = [0, 0], sizes = [2, 32], strides = [1, 1]} : vector<2x128xf32> to vector<2x32xf32>
    %194 = vector.extract_strided_slice %191 {offsets = [0, 32], sizes = [2, 32], strides = [1, 1]} : vector<2x128xf32> to vector<2x32xf32>
    %195 = vector.extract_strided_slice %192 {offsets = [0, 64], sizes = [2, 32], strides = [1, 1]} : vector<2x128xf32> to vector<2x32xf32>
    %196 = vector.extract_strided_slice %191 {offsets = [0, 96], sizes = [2, 32], strides = [1, 1]} : vector<2x128xf32> to vector<2x32xf32>
    %197 = arith.mulf %194, %161 : vector<2x32xf32>
    %198 = arith.mulf %193, %195 : vector<2x32xf32>
    %199 = arith.addf %197, %198 : vector<2x32xf32>
    %200 = math.tanh %199 : vector<2x32xf32>
    %201 = arith.mulf %196, %200 : vector<2x32xf32>
    %c8_36 = arith.constant 8 : index
    %c0_37 = arith.constant 0 : index
    %202 = vector.load %arg3[%c8_36, %c0_37] : memref<16x32xf32, #tpu.memory_space<vmem>>, vector<2x32xf32>
    tpu.vector_store %arg3[%c8_36, %c0_37], %201 {strides = array<i32>} : memref<16x32xf32, #tpu.memory_space<vmem>>, vector<2x32xf32>,
    %203 = vector.extract_strided_slice %8 {offsets = [10, 0], sizes = [2, 128], strides = [1, 1]} : vector<16x128xf32> to vector<2x128xf32>
    %cst_38 = arith.constant dense<0.000000e+00> : vector<2x128xf32>
    %204 = tpu.matmul %182, %1, %cst_38 {dimension_numbers = #tpu.dot_dimension_numbers<[1], [0], [0], [1], [0, 0, 1, 1], [], []>} : vector<2x32xf32>, vector<32x128xf32>, vector<2x128xf32> -> vector<2x128xf32>
    %205 = arith.addf %203, %204 : vector<2x128xf32>
    %206 = arith.negf %205 : vector<2x128xf32>
    %207 = math.exp %206 : vector<2x128xf32>
    %cst_39 = arith.constant 1.000000e+00 : f32
    %208 = vector.broadcast %cst_39 : f32 to vector<2x128xf32>
    %209 = arith.addf %208, %207 : vector<2x128xf32>
    %210 = arith.divf %208, %209 : vector<2x128xf32>
    %211 = math.tanh %205 : vector<2x128xf32>
    %212 = vector.extract_strided_slice %210 {offsets = [0, 0], sizes = [2, 32], strides = [1, 1]} : vector<2x128xf32> to vector<2x32xf32>
    %213 = vector.extract_strided_slice %210 {offsets = [0, 32], sizes = [2, 32], strides = [1, 1]} : vector<2x128xf32> to vector<2x32xf32>
    %214 = vector.extract_strided_slice %211 {offsets = [0, 64], sizes = [2, 32], strides = [1, 1]} : vector<2x128xf32> to vector<2x32xf32>
    %215 = vector.extract_strided_slice %210 {offsets = [0, 96], sizes = [2, 32], strides = [1, 1]} : vector<2x128xf32> to vector<2x32xf32>
    %216 = arith.mulf %213, %180 : vector<2x32xf32>
    %217 = arith.mulf %212, %214 : vector<2x32xf32>
    %218 = arith.addf %216, %217 : vector<2x32xf32>
    %219 = math.tanh %218 : vector<2x32xf32>
    %220 = arith.mulf %215, %219 : vector<2x32xf32>
    %221 = tpu.concatenate %220, %201 in 1 : vector<2x32xf32>, vector<2x32xf32> -> vector<2x64xf32>
    %cst_40 = arith.constant dense<0.000000e+00> : vector<2x128xf32>
    %222 = tpu.matmul %221, %3, %cst_40 {dimension_numbers = #tpu.dot_dimension_numbers<[1], [0], [0], [1], [0, 0, 1, 1], [], []>} : vector<2x64xf32>, vector<64x128xf32>, vector<2x128xf32> -> vector<2x128xf32>
    %223 = vector.broadcast %4 : vector<1x128xf32> to vector<2x128xf32>
    %224 = arith.addf %222, %223 : vector<2x128xf32>
    %225 = arith.negf %224 : vector<2x128xf32>
    %226 = math.exp %225 : vector<2x128xf32>
    %cst_41 = arith.constant 1.000000e+00 : f32
    %227 = vector.broadcast %cst_41 : f32 to vector<2x128xf32>
    %228 = arith.addf %227, %226 : vector<2x128xf32>
    %229 = arith.divf %227, %228 : vector<2x128xf32>
    %230 = math.tanh %224 : vector<2x128xf32>
    %231 = vector.extract_strided_slice %229 {offsets = [0, 0], sizes = [2, 32], strides = [1, 1]} : vector<2x128xf32> to vector<2x32xf32>
    %232 = vector.extract_strided_slice %229 {offsets = [0, 32], sizes = [2, 32], strides = [1, 1]} : vector<2x128xf32> to vector<2x32xf32>
    %233 = vector.extract_strided_slice %230 {offsets = [0, 64], sizes = [2, 32], strides = [1, 1]} : vector<2x128xf32> to vector<2x32xf32>
    %234 = vector.extract_strided_slice %229 {offsets = [0, 96], sizes = [2, 32], strides = [1, 1]} : vector<2x128xf32> to vector<2x32xf32>
    %235 = arith.mulf %232, %199 : vector<2x32xf32>
    %236 = arith.mulf %231, %233 : vector<2x32xf32>
    %237 = arith.addf %235, %236 : vector<2x32xf32>
    %238 = math.tanh %237 : vector<2x32xf32>
    %239 = arith.mulf %234, %238 : vector<2x32xf32>
    %c10 = arith.constant 10 : index
    %c0_42 = arith.constant 0 : index
    %240 = vector.load %arg3[%c10, %c0_42] : memref<16x32xf32, #tpu.memory_space<vmem>>, vector<2x32xf32>
    tpu.vector_store %arg3[%c10, %c0_42], %239 {strides = array<i32>} : memref<16x32xf32, #tpu.memory_space<vmem>>, vector<2x32xf32>,
    %241 = vector.extract_strided_slice %8 {offsets = [12, 0], sizes = [2, 128], strides = [1, 1]} : vector<16x128xf32> to vector<2x128xf32>
    %cst_43 = arith.constant dense<0.000000e+00> : vector<2x128xf32>
    %242 = tpu.matmul %220, %1, %cst_43 {dimension_numbers = #tpu.dot_dimension_numbers<[1], [0], [0], [1], [0, 0, 1, 1], [], []>} : vector<2x32xf32>, vector<32x128xf32>, vector<2x128xf32> -> vector<2x128xf32>
    %243 = arith.addf %241, %242 : vector<2x128xf32>
    %244 = arith.negf %243 : vector<2x128xf32>
    %245 = math.exp %244 : vector<2x128xf32>
    %cst_44 = arith.constant 1.000000e+00 : f32
    %246 = vector.broadcast %cst_44 : f32 to vector<2x128xf32>
    %247 = arith.addf %246, %245 : vector<2x128xf32>
    %248 = arith.divf %246, %247 : vector<2x128xf32>
    %249 = math.tanh %243 : vector<2x128xf32>
    %250 = vector.extract_strided_slice %248 {offsets = [0, 0], sizes = [2, 32], strides = [1, 1]} : vector<2x128xf32> to vector<2x32xf32>
    %251 = vector.extract_strided_slice %248 {offsets = [0, 32], sizes = [2, 32], strides = [1, 1]} : vector<2x128xf32> to vector<2x32xf32>
    %252 = vector.extract_strided_slice %249 {offsets = [0, 64], sizes = [2, 32], strides = [1, 1]} : vector<2x128xf32> to vector<2x32xf32>
    %253 = vector.extract_strided_slice %248 {offsets = [0, 96], sizes = [2, 32], strides = [1, 1]} : vector<2x128xf32> to vector<2x32xf32>
    %254 = arith.mulf %251, %218 : vector<2x32xf32>
    %255 = arith.mulf %250, %252 : vector<2x32xf32>
    %256 = arith.addf %254, %255 : vector<2x32xf32>
    %257 = math.tanh %256 : vector<2x32xf32>
    %258 = arith.mulf %253, %257 : vector<2x32xf32>
    %259 = tpu.concatenate %258, %239 in 1 : vector<2x32xf32>, vector<2x32xf32> -> vector<2x64xf32>
    %cst_45 = arith.constant dense<0.000000e+00> : vector<2x128xf32>
    %260 = tpu.matmul %259, %3, %cst_45 {dimension_numbers = #tpu.dot_dimension_numbers<[1], [0], [0], [1], [0, 0, 1, 1], [], []>} : vector<2x64xf32>, vector<64x128xf32>, vector<2x128xf32> -> vector<2x128xf32>
    %261 = vector.broadcast %4 : vector<1x128xf32> to vector<2x128xf32>
    %262 = arith.addf %260, %261 : vector<2x128xf32>
    %263 = arith.negf %262 : vector<2x128xf32>
    %264 = math.exp %263 : vector<2x128xf32>
    %cst_46 = arith.constant 1.000000e+00 : f32
    %265 = vector.broadcast %cst_46 : f32 to vector<2x128xf32>
    %266 = arith.addf %265, %264 : vector<2x128xf32>
    %267 = arith.divf %265, %266 : vector<2x128xf32>
    %268 = math.tanh %262 : vector<2x128xf32>
    %269 = vector.extract_strided_slice %267 {offsets = [0, 0], sizes = [2, 32], strides = [1, 1]} : vector<2x128xf32> to vector<2x32xf32>
    %270 = vector.extract_strided_slice %267 {offsets = [0, 32], sizes = [2, 32], strides = [1, 1]} : vector<2x128xf32> to vector<2x32xf32>
    %271 = vector.extract_strided_slice %268 {offsets = [0, 64], sizes = [2, 32], strides = [1, 1]} : vector<2x128xf32> to vector<2x32xf32>
    %272 = vector.extract_strided_slice %267 {offsets = [0, 96], sizes = [2, 32], strides = [1, 1]} : vector<2x128xf32> to vector<2x32xf32>
    %273 = arith.mulf %270, %237 : vector<2x32xf32>
    %274 = arith.mulf %269, %271 : vector<2x32xf32>
    %275 = arith.addf %273, %274 : vector<2x32xf32>
    %276 = math.tanh %275 : vector<2x32xf32>
    %277 = arith.mulf %272, %276 : vector<2x32xf32>
    %c12 = arith.constant 12 : index
    %c0_47 = arith.constant 0 : index
    %278 = vector.load %arg3[%c12, %c0_47] : memref<16x32xf32, #tpu.memory_space<vmem>>, vector<2x32xf32>
    tpu.vector_store %arg3[%c12, %c0_47], %277 {strides = array<i32>} : memref<16x32xf32, #tpu.memory_space<vmem>>, vector<2x32xf32>,
    %279 = vector.extract_strided_slice %8 {offsets = [14, 0], sizes = [2, 128], strides = [1, 1]} : vector<16x128xf32> to vector<2x128xf32>
    %cst_48 = arith.constant dense<0.000000e+00> : vector<2x128xf32>
    %280 = tpu.matmul %258, %1, %cst_48 {dimension_numbers = #tpu.dot_dimension_numbers<[1], [0], [0], [1], [0, 0, 1, 1], [], []>} : vector<2x32xf32>, vector<32x128xf32>, vector<2x128xf32> -> vector<2x128xf32>
    %281 = arith.addf %279, %280 : vector<2x128xf32>
    %282 = arith.negf %281 : vector<2x128xf32>
    %283 = math.exp %282 : vector<2x128xf32>
    %cst_49 = arith.constant 1.000000e+00 : f32
    %284 = vector.broadcast %cst_49 : f32 to vector<2x128xf32>
    %285 = arith.addf %284, %283 : vector<2x128xf32>
    %286 = arith.divf %284, %285 : vector<2x128xf32>
    %287 = math.tanh %281 : vector<2x128xf32>
    %288 = vector.extract_strided_slice %286 {offsets = [0, 0], sizes = [2, 32], strides = [1, 1]} : vector<2x128xf32> to vector<2x32xf32>
    %289 = vector.extract_strided_slice %286 {offsets = [0, 32], sizes = [2, 32], strides = [1, 1]} : vector<2x128xf32> to vector<2x32xf32>
    %290 = vector.extract_strided_slice %287 {offsets = [0, 64], sizes = [2, 32], strides = [1, 1]} : vector<2x128xf32> to vector<2x32xf32>
    %291 = vector.extract_strided_slice %286 {offsets = [0, 96], sizes = [2, 32], strides = [1, 1]} : vector<2x128xf32> to vector<2x32xf32>
    %292 = arith.mulf %289, %256 : vector<2x32xf32>
    %293 = arith.mulf %288, %290 : vector<2x32xf32>
    %294 = arith.addf %292, %293 : vector<2x32xf32>
    %295 = math.tanh %294 : vector<2x32xf32>
    %296 = arith.mulf %291, %295 : vector<2x32xf32>
    %297 = tpu.concatenate %296, %277 in 1 : vector<2x32xf32>, vector<2x32xf32> -> vector<2x64xf32>
    %cst_50 = arith.constant dense<0.000000e+00> : vector<2x128xf32>
    %298 = tpu.matmul %297, %3, %cst_50 {dimension_numbers = #tpu.dot_dimension_numbers<[1], [0], [0], [1], [0, 0, 1, 1], [], []>} : vector<2x64xf32>, vector<64x128xf32>, vector<2x128xf32> -> vector<2x128xf32>
    %299 = vector.broadcast %4 : vector<1x128xf32> to vector<2x128xf32>
    %300 = arith.addf %298, %299 : vector<2x128xf32>
    %301 = arith.negf %300 : vector<2x128xf32>
    %302 = math.exp %301 : vector<2x128xf32>
    %cst_51 = arith.constant 1.000000e+00 : f32
    %303 = vector.broadcast %cst_51 : f32 to vector<2x128xf32>
    %304 = arith.addf %303, %302 : vector<2x128xf32>
    %305 = arith.divf %303, %304 : vector<2x128xf32>
    %306 = math.tanh %300 : vector<2x128xf32>
    %307 = vector.extract_strided_slice %305 {offsets = [0, 0], sizes = [2, 32], strides = [1, 1]} : vector<2x128xf32> to vector<2x32xf32>
    %308 = vector.extract_strided_slice %305 {offsets = [0, 32], sizes = [2, 32], strides = [1, 1]} : vector<2x128xf32> to vector<2x32xf32>
    %309 = vector.extract_strided_slice %306 {offsets = [0, 64], sizes = [2, 32], strides = [1, 1]} : vector<2x128xf32> to vector<2x32xf32>
    %310 = vector.extract_strided_slice %305 {offsets = [0, 96], sizes = [2, 32], strides = [1, 1]} : vector<2x128xf32> to vector<2x32xf32>
    %311 = arith.mulf %308, %275 : vector<2x32xf32>
    %312 = arith.mulf %307, %309 : vector<2x32xf32>
    %313 = arith.addf %311, %312 : vector<2x32xf32>
    %314 = math.tanh %313 : vector<2x32xf32>
    %315 = arith.mulf %310, %314 : vector<2x32xf32>
    %c14 = arith.constant 14 : index
    %c0_52 = arith.constant 0 : index
    %316 = vector.load %arg3[%c14, %c0_52] : memref<16x32xf32, #tpu.memory_space<vmem>>, vector<2x32xf32>
    tpu.vector_store %arg3[%c14, %c0_52], %315 {strides = array<i32>} : memref<16x32xf32, #tpu.memory_space<vmem>>, vector<2x32xf32>,
    %c120 = arith.constant 120 : index
    %c0_53 = arith.constant 0 : index
    %317 = vector.load %arg1[%c120, %c0_53] : memref<360x128xf32, #tpu.memory_space<vmem>>, vector<32x32xf32>
    %c152 = arith.constant 152 : index
    %c0_54 = arith.constant 0 : index
    %318 = vector.load %arg1[%c152, %c0_54] : memref<360x128xf32, #tpu.memory_space<vmem>>, vector<1x32xf32>
    %c160 = arith.constant 160 : index
    %c0_55 = arith.constant 0 : index
    %319 = vector.load %arg1[%c160, %c0_55] : memref<360x128xf32, #tpu.memory_space<vmem>>, vector<32x64xf32>
    %c192 = arith.constant 192 : index
    %c0_56 = arith.constant 0 : index
    %320 = vector.load %arg1[%c192, %c0_56] : memref<360x128xf32, #tpu.memory_space<vmem>>, vector<1x64xf32>
    %c200 = arith.constant 200 : index
    %c0_57 = arith.constant 0 : index
    %321 = vector.load %arg1[%c200, %c0_57] : memref<360x128xf32, #tpu.memory_space<vmem>>, vector<32x32xf32>
    %c232 = arith.constant 232 : index
    %c0_58 = arith.constant 0 : index
    %322 = vector.load %arg1[%c232, %c0_58] : memref<360x128xf32, #tpu.memory_space<vmem>>, vector<1x32xf32>
    %c240 = arith.constant 240 : index
    %c0_59 = arith.constant 0 : index
    %323 = vector.load %arg1[%c240, %c0_59] : memref<360x128xf32, #tpu.memory_space<vmem>>, vector<32x8xf32>
    %c272 = arith.constant 272 : index
    %c0_60 = arith.constant 0 : index
    %324 = vector.load %arg1[%c272, %c0_60] : memref<360x128xf32, #tpu.memory_space<vmem>>, vector<8x32xf32>
    %cst_61 = arith.constant dense<0.000000e+00> : vector<2x32xf32>
    %325 = tpu.matmul %315, %317, %cst_61 {dimension_numbers = #tpu.dot_dimension_numbers<[1], [0], [0], [1], [0, 0, 1, 1], [], []>} : vector<2x32xf32>, vector<32x32xf32>, vector<2x32xf32> -> vector<2x32xf32>
    %326 = vector.broadcast %318 : vector<1x32xf32> to vector<2x32xf32>
    %327 = arith.addf %325, %326 : vector<2x32xf32>
    %cst_62 = arith.constant 5.000000e-01 : f32
    %328 = vector.broadcast %cst_62 : f32 to vector<2x32xf32>
    %329 = arith.mulf %327, %328 : vector<2x32xf32>
    %c0_63 = arith.constant 0 : index
    %c0_64 = arith.constant 0 : index
    %330 = vector.load %arg3[%c0_63, %c0_64] : memref<16x32xf32, #tpu.memory_space<vmem>>, vector<16x32xf32>
    %cst_65 = arith.constant dense<0.000000e+00> : vector<16x64xf32>
    %331 = tpu.matmul %330, %319, %cst_65 {dimension_numbers = #tpu.dot_dimension_numbers<[1], [0], [0], [1], [0, 0, 1, 1], [], []>} : vector<16x32xf32>, vector<32x64xf32>, vector<16x64xf32> -> vector<16x64xf32>
    %332 = vector.broadcast %320 : vector<1x64xf32> to vector<16x64xf32>
    %333 = arith.addf %331, %332 : vector<16x64xf32>
    %334 = vector.extract_strided_slice %333 {offsets = [0, 0], sizes = [16, 32], strides = [1, 1]} : vector<16x64xf32> to vector<16x32xf32>
    %335 = vector.extract_strided_slice %333 {offsets = [0, 32], sizes = [16, 32], strides = [1, 1]} : vector<16x64xf32> to vector<16x32xf32>
    %336 = tpu.iota {dimensions = array<i32: 0>} : vector<16x32xi32>
    %c2_i32 = arith.constant 2 : i32
    %c0_i32 = arith.constant 0 : i32
    %337 = arith.cmpi eq, %c2_i32, %c0_i32 : i32
    %c1_i32 = arith.constant 1 : i32
    %338 = arith.select %337, %c1_i32, %c2_i32 : i32
    %339 = vector.broadcast %338 : i32 to vector<16x32xi32>
    %340 = arith.remsi %336, %339 : vector<16x32xi32>
    %c0_i32_66 = arith.constant 0 : i32
    %341 = vector.broadcast %c0_i32_66 : i32 to vector<16x32xi32>
    %342 = arith.cmpi ne, %340, %341 : vector<16x32xi32>
    %c0_i32_67 = arith.constant 0 : i32
    %343 = vector.broadcast %c0_i32_67 : i32 to vector<16x32xi32>
    %344 = arith.cmpi slt, %340, %343 : vector<16x32xi32>
    %c0_i32_68 = arith.constant 0 : i32
    %345 = arith.cmpi slt, %338, %c0_i32_68 : i32
    %346 = vector.broadcast %345 : i1 to vector<16x32xi1>
    %347 = vector.broadcast %346 : vector<16x32xi1> to vector<16x32xi1>
    %348 = arith.xori %344, %347 : vector<16x32xi1>
    %349 = arith.andi %348, %342 : vector<16x32xi1>
    %350 = vector.broadcast %338 : i32 to vector<16x32xi32>
    %351 = arith.addi %340, %350 : vector<16x32xi32>
    %352 = arith.select %349, %351, %340 : vector<16x32xi1>, vector<16x32xi32>
    %cst_69 = arith.constant 0.000000e+00 : f32
    %353 = vector.broadcast %cst_69 : f32 to vector<16x32xf32>
    %c0_i32_70 = arith.constant 0 : i32
    %354 = vector.broadcast %c0_i32_70 : i32 to vector<16x32xi32>
    %355 = arith.cmpi eq, %352, %354 : vector<16x32xi32>
    %356 = vector.extract_strided_slice %329 {offsets = [0, 0], sizes = [1, 32], strides = [1, 1]} : vector<2x32xf32> to vector<1x32xf32>
    %357 = vector.shape_cast %356 : vector<1x32xf32> to vector<1x32xf32>
    %358 = vector.broadcast %357 : vector<1x32xf32> to vector<16x32xf32>
    %359 = arith.select %355, %358, %353 : vector<16x32xi1>, vector<16x32xf32>
    %c1_i32_71 = arith.constant 1 : i32
    %360 = vector.broadcast %c1_i32_71 : i32 to vector<16x32xi32>
    %361 = arith.cmpi eq, %352, %360 : vector<16x32xi32>
    %362 = vector.extract_strided_slice %329 {offsets = [1, 0], sizes = [1, 32], strides = [1, 1]} : vector<2x32xf32> to vector<1x32xf32>
    %363 = vector.shape_cast %362 : vector<1x32xf32> to vector<1x32xf32>
    %364 = vector.broadcast %363 : vector<1x32xf32> to vector<16x32xf32>
    %365 = arith.select %361, %364, %359 : vector<16x32xi1>, vector<16x32xf32>
    %366 = arith.mulf %334, %365 : vector<16x32xf32>
    %cst_72 = arith.constant dense<0.000000e+00> : vector<16x8xf32>
    %367 = tpu.matmul %366, %323, %cst_72 {dimension_numbers = #tpu.dot_dimension_numbers<[1], [0], [0], [1], [0, 0, 1, 1], [], []>} : vector<16x32xf32>, vector<32x8xf32>, vector<16x8xf32> -> vector<16x8xf32>
    %368 = tpu.iota {dimensions = array<i32: 0>} : vector<16x8xi32>
    %c2_i32_73 = arith.constant 2 : i32
    %c0_i32_74 = arith.constant 0 : i32
    %369 = arith.cmpi eq, %c2_i32_73, %c0_i32_74 : i32
    %c1_i32_75 = arith.constant 1 : i32
    %370 = arith.select %369, %c1_i32_75, %c2_i32_73 : i32
    %371 = vector.broadcast %370 : i32 to vector<16x8xi32>
    %372 = arith.remsi %368, %371 : vector<16x8xi32>
    %c0_i32_76 = arith.constant 0 : i32
    %373 = vector.broadcast %c0_i32_76 : i32 to vector<16x8xi32>
    %374 = arith.cmpi ne, %372, %373 : vector<16x8xi32>
    %c0_i32_77 = arith.constant 0 : i32
    %375 = vector.broadcast %c0_i32_77 : i32 to vector<16x8xi32>
    %376 = arith.cmpi slt, %372, %375 : vector<16x8xi32>
    %c0_i32_78 = arith.constant 0 : i32
    %377 = arith.cmpi slt, %370, %c0_i32_78 : i32
    %378 = vector.broadcast %377 : i1 to vector<16x8xi1>
    %379 = vector.broadcast %378 : vector<16x8xi1> to vector<16x8xi1>
    %380 = arith.xori %376, %379 : vector<16x8xi1>
    %381 = arith.andi %380, %374 : vector<16x8xi1>
    %382 = vector.broadcast %370 : i32 to vector<16x8xi32>
    %383 = arith.addi %372, %382 : vector<16x8xi32>
    %384 = arith.select %381, %383, %372 : vector<16x8xi1>, vector<16x8xi32>
    %385 = tpu.iota {dimensions = array<i32: 0>} : vector<2x32xi32>
    %cst_79 = arith.constant 0.000000e+00 : f32
    %386 = vector.broadcast %cst_79 : f32 to vector<2x32xf32>
    %c0_i32_80 = arith.constant 0 : i32
    %387 = vector.broadcast %c0_i32_80 : i32 to vector<16x8xi32>
    %388 = arith.cmpi eq, %384, %387 : vector<16x8xi32>
    %cst_81 = arith.constant -1.000000e+30 : f32
    %389 = vector.broadcast %cst_81 : f32 to vector<16x8xf32>
    %390 = arith.select %388, %367, %389 : vector<16x8xi1>, vector<16x8xf32>
    %cst_82 = arith.constant dense<0xFF800000> : vector<8xf32>
    %391 = vector.multi_reduction <maximumf>, %390, %cst_82 [0] : vector<16x8xf32> to vector<8xf32>
    %392 = vector.shape_cast %391 : vector<8xf32> to vector<1x8xf32>
    %393 = vector.broadcast %392 : vector<1x8xf32> to vector<16x8xf32>
    %394 = arith.subf %390, %393 : vector<16x8xf32>
    %395 = math.exp %394 : vector<16x8xf32>
    %cst_83 = arith.constant 0.000000e+00 : f32
    %396 = vector.broadcast %cst_83 : f32 to vector<16x8xf32>
    %397 = arith.select %388, %395, %396 : vector<16x8xi1>, vector<16x8xf32>
    %cst_84 = arith.constant dense<0.000000e+00> : vector<8xf32>
    %398 = vector.multi_reduction <add>, %397, %cst_84 [0] : vector<16x8xf32> to vector<8xf32>
    %399 = vector.shape_cast %398 : vector<8xf32> to vector<1x8xf32>
    %cst_85 = arith.constant 1.000000e+00 : f32
    %400 = vector.broadcast %cst_85 : f32 to vector<1x8xf32>
    %401 = arith.divf %400, %399 : vector<1x8xf32>
    %402 = vector.broadcast %401 : vector<1x8xf32> to vector<16x8xf32>
    %403 = arith.mulf %397, %402 : vector<16x8xf32>
    %cst_86 = arith.constant dense<0.000000e+00> : vector<16x32xf32>
    %404 = tpu.matmul %403, %324, %cst_86 {dimension_numbers = #tpu.dot_dimension_numbers<[1], [0], [0], [1], [0, 0, 1, 1], [], []>} : vector<16x8xf32>, vector<8x32xf32>, vector<16x32xf32> -> vector<16x32xf32>
    %405 = arith.mulf %404, %335 : vector<16x32xf32>
    %cst_87 = arith.constant dense<0.000000e+00> : vector<32xf32>
    %406 = vector.multi_reduction <add>, %405, %cst_87 [0] : vector<16x32xf32> to vector<32xf32>
    %407 = vector.shape_cast %406 : vector<32xf32> to vector<1x32xf32>
    %c0_i32_88 = arith.constant 0 : i32
    %408 = vector.broadcast %c0_i32_88 : i32 to vector<2x32xi32>
    %409 = arith.cmpi eq, %385, %408 : vector<2x32xi32>
    %410 = vector.shape_cast %407 : vector<1x32xf32> to vector<1x32xf32>
    %411 = vector.broadcast %410 : vector<1x32xf32> to vector<2x32xf32>
    %412 = arith.select %409, %411, %386 : vector<2x32xi1>, vector<2x32xf32>
    %c1_i32_89 = arith.constant 1 : i32
    %413 = vector.broadcast %c1_i32_89 : i32 to vector<16x8xi32>
    %414 = arith.cmpi eq, %384, %413 : vector<16x8xi32>
    %cst_90 = arith.constant -1.000000e+30 : f32
    %415 = vector.broadcast %cst_90 : f32 to vector<16x8xf32>
    %416 = arith.select %414, %367, %415 : vector<16x8xi1>, vector<16x8xf32>
    %cst_91 = arith.constant dense<0xFF800000> : vector<8xf32>
    %417 = vector.multi_reduction <maximumf>, %416, %cst_91 [0] : vector<16x8xf32> to vector<8xf32>
    %418 = vector.shape_cast %417 : vector<8xf32> to vector<1x8xf32>
    %419 = vector.broadcast %418 : vector<1x8xf32> to vector<16x8xf32>
    %420 = arith.subf %416, %419 : vector<16x8xf32>
    %421 = math.exp %420 : vector<16x8xf32>
    %cst_92 = arith.constant 0.000000e+00 : f32
    %422 = vector.broadcast %cst_92 : f32 to vector<16x8xf32>
    %423 = arith.select %414, %421, %422 : vector<16x8xi1>, vector<16x8xf32>
    %cst_93 = arith.constant dense<0.000000e+00> : vector<8xf32>
    %424 = vector.multi_reduction <add>, %423, %cst_93 [0] : vector<16x8xf32> to vector<8xf32>
    %425 = vector.shape_cast %424 : vector<8xf32> to vector<1x8xf32>
    %cst_94 = arith.constant 1.000000e+00 : f32
    %426 = vector.broadcast %cst_94 : f32 to vector<1x8xf32>
    %427 = arith.divf %426, %425 : vector<1x8xf32>
    %428 = vector.broadcast %427 : vector<1x8xf32> to vector<16x8xf32>
    %429 = arith.mulf %423, %428 : vector<16x8xf32>
    %cst_95 = arith.constant dense<0.000000e+00> : vector<16x32xf32>
    %430 = tpu.matmul %429, %324, %cst_95 {dimension_numbers = #tpu.dot_dimension_numbers<[1], [0], [0], [1], [0, 0, 1, 1], [], []>} : vector<16x8xf32>, vector<8x32xf32>, vector<16x32xf32> -> vector<16x32xf32>
    %431 = arith.mulf %430, %335 : vector<16x32xf32>
    %cst_96 = arith.constant dense<0.000000e+00> : vector<32xf32>
    %432 = vector.multi_reduction <add>, %431, %cst_96 [0] : vector<16x32xf32> to vector<32xf32>
    %433 = vector.shape_cast %432 : vector<32xf32> to vector<1x32xf32>
    %c1_i32_97 = arith.constant 1 : i32
    %434 = vector.broadcast %c1_i32_97 : i32 to vector<2x32xi32>
    %435 = arith.cmpi eq, %385, %434 : vector<2x32xi32>
    %436 = vector.shape_cast %433 : vector<1x32xf32> to vector<1x32xf32>
    %437 = vector.broadcast %436 : vector<1x32xf32> to vector<2x32xf32>
    %438 = arith.select %435, %437, %412 : vector<2x32xi1>, vector<2x32xf32>
    %cst_98 = arith.constant dense<0.000000e+00> : vector<2x32xf32>
    %439 = tpu.matmul %438, %321, %cst_98 {dimension_numbers = #tpu.dot_dimension_numbers<[1], [0], [0], [1], [0, 0, 1, 1], [], []>} : vector<2x32xf32>, vector<32x32xf32>, vector<2x32xf32> -> vector<2x32xf32>
    %440 = vector.broadcast %322 : vector<1x32xf32> to vector<2x32xf32>
    %441 = arith.addf %439, %440 : vector<2x32xf32>
    %c280 = arith.constant 280 : index
    %c0_99 = arith.constant 0 : index
    %442 = vector.load %arg1[%c280, %c0_99] : memref<360x128xf32, #tpu.memory_space<vmem>>, vector<32x16xf32>
    %c312 = arith.constant 312 : index
    %c0_100 = arith.constant 0 : index
    %443 = vector.load %arg1[%c312, %c0_100] : memref<360x128xf32, #tpu.memory_space<vmem>>, vector<1x16xf32>
    %c320 = arith.constant 320 : index
    %c0_101 = arith.constant 0 : index
    %444 = vector.load %arg1[%c320, %c0_101] : memref<360x128xf32, #tpu.memory_space<vmem>>, vector<16x8xf32>
    %c336 = arith.constant 336 : index
    %c0_102 = arith.constant 0 : index
    %445 = vector.load %arg1[%c336, %c0_102] : memref<360x128xf32, #tpu.memory_space<vmem>>, vector<1x8xf32>
    %c344 = arith.constant 344 : index
    %c0_103 = arith.constant 0 : index
    %446 = vector.load %arg1[%c344, %c0_103] : memref<360x128xf32, #tpu.memory_space<vmem>>, vector<8x3xf32>
    %c352 = arith.constant 352 : index
    %c0_104 = arith.constant 0 : index
    %447 = vector.load %arg1[%c352, %c0_104] : memref<360x128xf32, #tpu.memory_space<vmem>>, vector<1x3xf32>
    %cst_105 = arith.constant dense<0.000000e+00> : vector<2x16xf32>
    %448 = tpu.matmul %441, %442, %cst_105 {dimension_numbers = #tpu.dot_dimension_numbers<[1], [0], [0], [1], [0, 0, 1, 1], [], []>} : vector<2x32xf32>, vector<32x16xf32>, vector<2x16xf32> -> vector<2x16xf32>
    %449 = vector.broadcast %443 : vector<1x16xf32> to vector<2x16xf32>
    %450 = arith.addf %448, %449 : vector<2x16xf32>
    %cst_106 = arith.constant 0.000000e+00 : f32
    %451 = vector.broadcast %cst_106 : f32 to vector<2x16xf32>
    %452 = arith.maximumf %450, %451 : vector<2x16xf32>
    %cst_107 = arith.constant dense<0.000000e+00> : vector<2x8xf32>
    %453 = tpu.matmul %452, %444, %cst_107 {dimension_numbers = #tpu.dot_dimension_numbers<[1], [0], [0], [1], [0, 0, 1, 1], [], []>} : vector<2x16xf32>, vector<16x8xf32>, vector<2x8xf32> -> vector<2x8xf32>
    %454 = vector.broadcast %445 : vector<1x8xf32> to vector<2x8xf32>
    %455 = arith.addf %453, %454 : vector<2x8xf32>
    %cst_108 = arith.constant 0.000000e+00 : f32
    %456 = vector.broadcast %cst_108 : f32 to vector<2x8xf32>
    %457 = arith.maximumf %455, %456 : vector<2x8xf32>
    %cst_109 = arith.constant dense<0.000000e+00> : vector<2x3xf32>
    %458 = tpu.matmul %457, %446, %cst_109 {dimension_numbers = #tpu.dot_dimension_numbers<[1], [0], [0], [1], [0, 0, 1, 1], [], []>} : vector<2x8xf32>, vector<8x3xf32>, vector<2x3xf32> -> vector<2x3xf32>
    %459 = vector.broadcast %447 : vector<1x3xf32> to vector<2x3xf32>
    %460 = arith.addf %458, %459 : vector<2x3xf32>
    %461 = tpu.iota {dimensions = array<i32: 1>} : vector<2x3xi32>
    %c0_i32_110 = arith.constant 0 : i32
    %462 = vector.broadcast %c0_i32_110 : i32 to vector<2x3xi32>
    %463 = arith.cmpi eq, %461, %462 : vector<2x3xi32>
    %c1_i32_111 = arith.constant 1 : i32
    %464 = vector.broadcast %c1_i32_111 : i32 to vector<2x3xi32>
    %465 = arith.cmpi eq, %461, %464 : vector<2x3xi32>
    %466 = arith.negf %460 : vector<2x3xf32>
    %467 = math.exp %466 : vector<2x3xf32>
    %cst_112 = arith.constant 1.000000e+00 : f32
    %468 = vector.broadcast %cst_112 : f32 to vector<2x3xf32>
    %469 = arith.addf %468, %467 : vector<2x3xf32>
    %470 = arith.divf %468, %469 : vector<2x3xf32>
    %cst_113 = arith.constant 5.000000e-01 : f32
    %471 = vector.broadcast %cst_113 : f32 to vector<2x3xf32>
    %472 = arith.mulf %470, %471 : vector<2x3xf32>
    %473 = math.tanh %460 : vector<2x3xf32>
    %cst_114 = arith.constant 3.000000e-01 : f32
    %474 = vector.broadcast %cst_114 : f32 to vector<2x3xf32>
    %475 = arith.mulf %473, %474 : vector<2x3xf32>
    %476 = arith.select %465, %472, %475 : vector<2x3xi1>, vector<2x3xf32>
    %477 = arith.select %463, %460, %476 : vector<2x3xi1>, vector<2x3xf32>
    %c0_115 = arith.constant 0 : index
    %c0_116 = arith.constant 0 : index
    %478 = vector.load %arg2[%c0_115, %c0_116] : memref<2x3xf32, #tpu.memory_space<vmem>>, vector<2x3xf32>
    tpu.vector_store %arg2[%c0_115, %c0_116], %477 {strides = array<i32>} : memref<2x3xf32, #tpu.memory_space<vmem>>, vector<2x3xf32>,
    return
  }
}

</mosaic_0001>

<bundles_post_ra>
// kernel: forward.1
= control target key start
LH: loop header
LB: loop body
LE: loop exit
PB: predicated region body
PF: predicated region fallthrough
CT: control target
= control target key end

     0   :  { %7 = vsyncpa [#allocation4], 0  ;;  %s3658_s9 = smov [#allocation3]   ;;  %s4149_s0 = inlined_call_operand.vmem [shape: f32[16,8], index: 0, kind: input, shape index: {}]   ;;  %s4150_s1 = inlined_call_operand.hbm [shape: f32[360,128], index: 1, kind: input, shape index: {}]   ;;  %s4151_s2 = inlined_call_operand.vmem [shape: f32[2,3], index: 2, kind: output, shape index: {}]  }
   0x1   :  { %s15_s10 = sshll.u32 %s3658_s9, 4  ;;  %s3634_s13 = scalar_lea.hbm %s4150_s1, 5760  ;;  %s16_s10 = int_to_ptr.vmem [resolvable:$true] %s15_s10 }
   0x2   :  { %p3635_p0 = scmp.ne.s32.totalorder %s4150_s1, %s3634_s13  ;;  %p3638_p1 = scmp.lt.u32.totalorder %s3634_s13, %s4150_s1 }
   0x4   :  { %p3640_p2 = pnand %p3638_p1, %p3635_p0 }
   0x6   :  { %3643 = shalt.err (!%p3640_p2)
}
   0x7   :  { %s3644_s18 = scalar_lea.vmem %s16_s10, 5760  ;;  %p3649_p4 = scmp.lt.s32.totalorder %s16_s10, %s16_s10 }
   0x8   :  { %p3645_p3 = scmp.ne.s32.totalorder %s16_s10, %s3644_s18  ;;  %p3650_p5 = scmp.lt.s32.totalorder %s3644_s18, %s3644_s18 }
   0xa   :  { %p3651_p6 = por %p3650_p5, %p3649_p4 }
   0xc   :  { %p3652_p7 = pnand %p3651_p6, %p3645_p3 }
   0xe   :  { %3655 = shalt.err (!%p3652_p7)
}
   0xf   :  { %s3659_s19 = smov 128   ;;  %s3660_s20 = smov 8  }
  0x10   :  { %21 = dma.hbm_to_vmem [thread:$0]  %s4150_s1, 5760, %s16_s10, [#allocation4], %s3659_s19, %s3659_s19, %s3660_s20  }
  0x11   :  { %3656 = dma.done.wait [#allocation4], 5760  }
  0x12   :  { %3657 = vsyncadd [#allocation4], 4294961536  ;;  %v3661_v0 = vmov 0.0|0.0   ;;  %vm3662_vm0 = vmmov 0   ;;  %v3663_v1 = vmov 0.0   ;;  %vm46_vm1 = vcmask 64512  }
  0x13   :  { %3298 = vmatprep.subr.bf16.mxu1 %v3661_v0  ;;  %2989 = vmatprep.mubr.msk.f32.mxu1 %vm3662_vm0, %v3663_v1  ;;  %v26_v2 = vld [vmem:[#allocation3 + $0x8] sm:$0xff]  ;;  %v27_v3 = vld [vmem:[#allocation3 + $0x10] sm:$0xff]  ;;  %v25_v4 = vld [vmem:[#allocation3] sm:$0xff]  ;;  %s3665_s26 = smov 32   ;;  %vm128_vm2 = vcmask 261120   ;;  %vm236_vm3 = vcmask 523264  }
  0x14   :  { %v3697_v5 = vpack.c.bf16 %v27_v3, %v26_v2  ;;  %2976 = vmatprep.subr.mxu0 %v25_v4  ;;  %v40_v6 = vld [vmem:[%s4149_s0] sm:$0xff]  ;;  %v41_v7 = vld [vmem:[%s4149_s0 + $0x8] sm:$0xff]  ;;  %v29_v9 = vld [vmem:[#allocation3 + $0x20] sm:$0xff]  ;;  %s3664_s0 = smov 64   ;;  %vm338_vm4 = vcmask 254976   ;;  %s3666_s27 = smov 96  }
  0x15   :  { %v28_v8 = vld [vmem:[#allocation3 + $0x18] sm:$0xff]  ;;  %2977 = vmatpush3.msra.mxu0 %v25_v4  ;;  %2978 = vmatprep.mubr.msk.f32.mxu0 %vm46_vm1, %v40_v6  ;;  %v2768_v11 = vld [vmem:[#allocation3 + $0x28] ss:$0 sm:$0xff]  ;;  %v31_v29 = vld [vmem:[#allocation3 + $0x30] sm:$0xff]  ;;  %vm2594_vm11 = vcmask 130048   ;;  %vm2761_vm14 = vcmask 17408  }
  0x16   :  { %3300 = vmatpush3.bf16.msra.mxu1 %v3697_v5  ;;  %2979 = vmatmul.mubr.msk.f32.vlgmr.msra.gmra.mrb[0].mxu0 %vm46_vm1, %v41_v7  ;;  %v3708_v10 = vpack.c.bf16 %v29_v9, %v28_v8  ;;  %v32_v30 = vld [vmem:[#allocation3 + $0x38] sm:$0xff]  ;;  %v33_v31 = vld [vmem:[#allocation3 + $0x40] sm:$0xff]  ;;  %v34_v33 = vld [vmem:[#allocation3 + $0x48] sm:$0xff] }
  0x17   :  { %3301 = vmatprep.subr.bf16.mxu1 %v3661_v0  ;;  %3304 = vmatprep.subr.bf16.mxu0 %v3661_v0  ;;  %v3733_v32 = vpack.c.bf16 %v32_v30, %v31_v29  ;;  %v3736_v34 = vpack.c.bf16 %v34_v33, %v33_v31  ;;  %v35_v35 = vld [vmem:[#allocation3 + $0x50] sm:$0xff]  ;;  %v36_v36 = vld [vmem:[#allocation3 + $0x58] sm:$0xff]  ;;  %v37_v38 = vld [vmem:[#allocation3 + $0x60] sm:$0xff] }
  0x18   :  { %3008 = vmatprep.mubr.msk.f32.mxu0 %vm3662_vm0, %v3663_v1  ;;  %v3740_v37 = vpack.c.bf16 %v36_v36, %v35_v35  ;;  %v38_v39 = vld [vmem:[#allocation3 + $0x68] sm:$0xff]  ;;  %v3770_v46 = vld [vmem:[#allocation3 + $0x70] ss:$0 sm:$0xff] }
  0x19   :  { %3306 = vmatpush3.bf16.msra.mxu0 %v3733_v32  ;;  %v3745_v41 = vpack.c.bf16 %v38_v39, %v37_v38 }
  0x1a   :  { %3303 = vmatpush3.bf16.msra.mxu1 %v3708_v10  ;;  %3307 = vmatprep.subr.bf16.mxu0 %v3661_v0 }
  0x1b   :  { %3316 = vmatprep.subr.bf16.mxu1 %v3661_v0 }
  0x1d   :  { %2990 = vmatmul.mubr.f32.vlgmr.msra.gmra.mrb[0].mxu1 %v3663_v1  ;;  %3309 = vmatpush3.bf16.msra.mxu0 %v3736_v34 }
  0x1e   :  { %3318 = vmatpush3.bf16.msra.mxu1 %v3697_v5  ;;  %3019 = vmatprep.mubr.msk.f32.mxu1 %vm3662_vm0, %v3663_v1 }
  0x1f   :  { %3319 = vmatprep.subr.bf16.mxu1 %v3661_v0  ;;  %3310 = vmatprep.subr.bf16.mxu0 %v3661_v0 }
  0x21   :  { %3312 = vmatpush3.bf16.msra.mxu0 %v3740_v37 }
  0x22   :  { %3321 = vmatpush3.bf16.msra.mxu1 %v3708_v10  ;;  %3313 = vmatprep.subr.bf16.mxu0 %v3661_v0 }
  0x23   :  { %3322 = vmatprep.subr.bf16.mxu1 %v3661_v0 }
  0x25   :  { %3315 = vmatpush3.bf16.msra.mxu0 %v3745_v41 }
  0x26   :  { %3334 = vmatprep.subr.bf16.mxu0 %v3661_v0 }
  0xe9   :  { %v2980_v12 = vpop.f32.mrb[0].mxu0 }
  0xea   :  { %v3723_v13 = vadd.f32 %v2980_v12, %v2768_v11  ;;  %v119_v14 = vpop.f32.mrb[1].mxu0 }
  0xeb   :  { %v3725_v15 = vadd.f32 %v2768_v11, %v119_v14 }
  0xf0   :  { %v198_v16 = vpop.f32.mrb[0].mxu1 }
  0xf1   :  { %v202_v17 = vadd.f32 %v198_v16, %v3725_v15  ;;  %v2991_v18 = vpop.f32.mrb[1].mxu1 }
  0xf3   :  { %3488 = vtanh.f32 %v202_v17  ;;  %v2771_v20 = vmul.f32 -1.442695, %v202_v17 }
  0xf5   :  { %3490 = vpow2.f32 %v2771_v20 }
  0xfd   :  { %v3489_v19 = vpop.eup %3488 }
  0xfe   :  { %212 = vrot.lane.b32.xlu0 %v3489_v19, %s3664_s0 }
  0xff   :  { %v3491_v21 = vpop.eup %3490 }
 0x100   :  { %v206_v22 = vadd.f32 1.0, %v3491_v21 }
 0x102   :  { %3492 = vrcp.f32 %v206_v22 }
 0x10c   :  { %v3493_v23 = vpop.eup %3492 }
 0x10d   :  { %v210_v26 = vmul.f32 0.0, %v3493_v23 }
 0x170   :  { %v213_v24 = vpop.permute.xlu0 %212 }
 0x171   :  { %v215_v25 = vmul.f32 %v3493_v23, %v213_v24 }
 0x173   :  { %217 = vrot.lane.b32.xlu0 %v215_v25, %s3665_s26 }
 0x1e5   :  { %v218_v27 = vpop.permute.xlu0 %217 }
 0x1e6   :  { %v3730_v28 = vadd.f32 %v218_v27, %v210_v26 }
 0x1e8   :  { %3494 = vtanh.f32 %v3730_v28  ;;  %v424_v7 = vrot.slane %v3730_v28, 6 }
 0x1f2   :  { %v3495_v40 = vpop.eup %3494 }
 0x1f3   :  { %223 = vrot.lane.b32.xlu1 %v3495_v40, %s3664_s0 }
 0x265   :  { %v224_v42 = vpop.permute.xlu1 %223 }
 0x266   :  { %v226_v43 = vmul.f32 %v3493_v23, %v224_v42 }
 0x268   :  { %228 = vrot.lane.b32.xlu1 %v226_v43, %s3665_s26 }
 0x2da   :  { %v229_v44 = vpop.permute.xlu1 %228 }
 0x2db   :  { %v231_v45 = vsel %vm128_vm2, %v229_v44, 0.0  ;;  %3020 = vmatmul.mubr.msk.f32.vlgmr.msra.gmra.mrb[2].mxu1 %vm128_vm2, %v229_v44 }
 0x2dc   :  { %3009 = vmatmul.mubr.msk.f32.vlgmr.msra.gmra.mrb[2].mxu0 %vm236_vm3, %v231_v45  ;;  %3324 = vmatpush3.bf16.msra.mxu1 %v3733_v32 }
 0x2dd   :  { %3325 = vmatprep.subr.bf16.mxu1 %v3661_v0  ;;  %3336 = vmatpush3.bf16.msra.mxu0 %v3697_v5 }
 0x2de   :  { %3337 = vmatprep.subr.bf16.mxu0 %v3661_v0  ;;  %3038 = vmatprep.mubr.msk.f32.mxu1 %vm3662_vm0, %v3663_v1 }
 0x2df   :  { %3049 = vmatprep.mubr.msk.f32.mxu0 %vm3662_vm0, %v3663_v1 }
 0x2e0   :  { %3327 = vmatpush3.bf16.msra.mxu1 %v3736_v34 }
 0x2e1   :  { %3328 = vmatprep.subr.bf16.mxu1 %v3661_v0  ;;  %3339 = vmatpush3.bf16.msra.mxu0 %v3708_v10 }
 0x2e2   :  { %3340 = vmatprep.subr.bf16.mxu0 %v3661_v0 }
 0x2e4   :  { %3330 = vmatpush3.bf16.msra.mxu1 %v3740_v37 }
 0x2e5   :  { %3331 = vmatprep.subr.bf16.mxu1 %v3661_v0 }
 0x2e8   :  { %3333 = vmatpush3.bf16.msra.mxu1 %v3745_v41 }
 0x2e9   :  { %3352 = vmatprep.subr.bf16.mxu1 %v3661_v0 }
 0x3ae   :  { %v408_v47 = vpop.f32.mrb[2].mxu1 }
 0x3af   :  { %v413_v48 = vrot.slane %v408_v47, 6  ;;  %v306_v49 = vpop.f32.mrb[2].mxu0  ;;  %v3021_v50 = vpop.f32.mrb[3].mxu1 }
 0x3b0   :  { %v307_v51 = vadd.f32 %v3770_v46, %v306_v49  ;;  %v3010_v52 = vpop.f32.mrb[3].mxu0 }
 0x3b1   :  { %v415_v53 = vadd.f32 %v413_v48, %v3725_v15 }
 0x3b2   :  { %3496 = vtanh.f32 %v307_v51  ;;  %v2774_v56 = vmul.f32 -1.442695, %v307_v51 }
 0x3b3   :  { %3498 = vtanh.f32 %v415_v53  ;;  %v2776_v57 = vmul.f32 -1.442695, %v415_v53 }
 0x3b4   :  { %3500 = vpow2.f32 %v2774_v56 }
 0x3b5   :  { %3502 = vpow2.f32 %v2776_v57 }
 0x3bc   :  { %v3497_v54 = vpop.eup %3496 }
 0x3bd   :  { %v3499_v55 = vpop.eup %3498  ;;  %319 = vrot.lane.b32.xlu0 %v3497_v54, %s3664_s0 }
 0x3be   :  { %428 = vrot.lane.b32.xlu1 %v3499_v55, %s3664_s0  ;;  %v3501_v58 = vpop.eup %3500 }
 0x3bf   :  { %v3503_v59 = vpop.eup %3502  ;;  %v313_v60 = vadd.f32 1.0, %v3501_v58 }
 0x3c0   :  { %v419_v61 = vadd.f32 1.0, %v3503_v59 }
 0x3c1   :  { %3504 = vrcp.f32 %v313_v60 }
 0x3c2   :  { %3506 = vrcp.f32 %v419_v61 }
 0x3cb   :  { %v3505_v62 = vpop.eup %3504 }
 0x3cc   :  { %v3507_v2 = vpop.eup %3506  ;;  %v317_v8 = vmul.f32 0.0, %v3505_v62 }
 0x3cd   :  { %v426_v11 = vmul.f32 %v3507_v2, %v424_v7 }
 0x42f   :  { %v320_v63 = vpop.permute.xlu0 %319 }
 0x430   :  { %v322_v3 = vmul.f32 %v3505_v62, %v320_v63  ;;  %v429_v4 = vpop.permute.xlu1 %428 }
 0x431   :  { %v431_v6 = vmul.f32 %v3507_v2, %v429_v4 }
 0x432   :  { %324 = vrot.lane.b32.xlu0 %v322_v3, %s3665_s26 }
 0x433   :  { %433 = vrot.lane.b32.xlu1 %v431_v6, %s3665_s26 }
 0x4a4   :  { %v325_v9 = vpop.permute.xlu0 %324 }
 0x4a5   :  { %v3779_v12 = vadd.f32 %v325_v9, %v317_v8  ;;  %v434_v14 = vpop.permute.xlu1 %433 }
 0x4a6   :  { %v3781_v16 = vadd.f32 %v434_v14, %v426_v11 }
 0x4a7   :  { %3508 = vtanh.f32 %v3779_v12 }
 0x4a8   :  { %3510 = vtanh.f32 %v3781_v16  ;;  %v642_v57 = vrot.slane %v3781_v16, 6 }
 0x4b1   :  { %v3509_v17 = vpop.eup %3508 }
 0x4b2   :  { %v3511_v18 = vpop.eup %3510  ;;  %330 = vrot.lane.b32.xlu0 %v3509_v17, %s3664_s0 }
 0x4b3   :  { %439 = vrot.lane.b32.xlu1 %v3511_v18, %s3664_s0 }
 0x524   :  { %v331_v19 = vpop.permute.xlu0 %330 }
 0x525   :  { %v3787_v20 = vmul.f32 %v3505_v62, %v331_v19  ;;  %v440_v21 = vpop.permute.xlu1 %439 }
 0x526   :  { %v442_v22 = vmul.f32 %v3507_v2, %v440_v21 }
 0x527   :  { %v447_v23 = vrot.slane %v3787_v20, 6 }
 0x528   :  { %444 = vrot.lane.b32.xlu0 %v442_v22, %s3665_s26  ;;  %v555_v24 = vrot.slane %v442_v22, 2 }
 0x529   :  { %448 = vrot.lane.b32.xlu1 %v447_v23, %s3664_s0 }
 0x52c   :  { %556 = vrot.lane.b32.xlu0 %v555_v24, %s3665_s26 }
 0x59a   :  { %v445_v25 = vpop.permute.xlu0 %444 }
 0x59b   :  { %v449_v26 = vpop.permute.xlu1 %448 }
 0x59c   :  { %v451_v27 = vsel %vm128_vm2, %v445_v25, %v449_v26 }
 0x59d   :  { %v453_v28 = vrot.slane %v451_v27, 2 }
 0x59e   :  { %v557_v29 = vpop.permute.xlu0 %556 }
 0x59f   :  { %3039 = vmatmul.mubr.msk.f32.vlgmr.msra.gmra.mrb[4].mxu1 %vm236_vm3, %v453_v28  ;;  %3050 = vmatmul.mubr.msk.f32.vlgmr.msra.gmra.mrb[4].mxu0 %vm128_vm2, %v557_v29 }
 0x5a0   :  { %3342 = vmatpush3.bf16.msra.mxu0 %v3733_v32  ;;  %3354 = vmatpush3.bf16.msra.mxu1 %v3697_v5 }
 0x5a1   :  { %3343 = vmatprep.subr.bf16.mxu0 %v3661_v0  ;;  %3355 = vmatprep.subr.bf16.mxu1 %v3661_v0 }
 0x5a2   :  { %3068 = vmatprep.mubr.msk.f32.mxu0 %vm3662_vm0, %v3663_v1  ;;  %3079 = vmatprep.mubr.msk.f32.mxu1 %vm3662_vm0, %v3663_v1 }
 0x5a4   :  { %3345 = vmatpush3.bf16.msra.mxu0 %v3736_v34  ;;  %3357 = vmatpush3.bf16.msra.mxu1 %v3708_v10 }
 0x5a5   :  { %3346 = vmatprep.subr.bf16.mxu0 %v3661_v0  ;;  %3358 = vmatprep.subr.bf16.mxu1 %v3661_v0 }
 0x5a8   :  { %3348 = vmatpush3.bf16.msra.mxu0 %v3740_v37 }
 0x5a9   :  { %3349 = vmatprep.subr.bf16.mxu0 %v3661_v0 }
 0x5ac   :  { %3351 = vmatpush3.bf16.msra.mxu0 %v3745_v41 }
 0x5ad   :  { %3370 = vmatprep.subr.bf16.mxu0 %v3661_v0 }
 0x672   :  { %v522_v30 = vpop.f32.mrb[4].mxu1  ;;  %v626_v31 = vpop.f32.mrb[4].mxu0 }
 0x673   :  { %v523_v33 = vadd.f32 %v3770_v46, %v522_v30  ;;  %v631_v35 = vrot.slane %v626_v31, 4  ;;  %v3040_v36 = vpop.f32.mrb[5].mxu1  ;;  %v3051_v38 = vpop.f32.mrb[5].mxu0 }
 0x675   :  { %3512 = vtanh.f32 %v523_v33  ;;  %v633_v39 = vadd.f32 %v631_v35, %v3725_v15  ;;  %v2778_v43 = vmul.f32 -1.442695, %v523_v33 }
 0x677   :  { %3514 = vtanh.f32 %v633_v39  ;;  %v2780_v44 = vmul.f32 -1.442695, %v633_v39 }
 0x678   :  { %3516 = vpow2.f32 %v2778_v43 }
 0x679   :  { %3518 = vpow2.f32 %v2780_v44 }
 0x67f   :  { %v3513_v40 = vpop.eup %3512 }
 0x680   :  { %535 = vrot.lane.b32.xlu1 %v3513_v40, %s3664_s0 }
 0x681   :  { %v3515_v42 = vpop.eup %3514 }
 0x682   :  { %646 = vrot.lane.b32.xlu0 %v3515_v42, %s3664_s0  ;;  %v3517_v45 = vpop.eup %3516 }
 0x683   :  { %v3519_v47 = vpop.eup %3518  ;;  %v529_v48 = vadd.f32 1.0, %v3517_v45 }
 0x684   :  { %v637_v49 = vadd.f32 1.0, %v3519_v47 }
 0x685   :  { %3520 = vrcp.f32 %v529_v48 }
 0x686   :  { %3522 = vrcp.f32 %v637_v49 }
 0x68f   :  { %v3521_v50 = vpop.eup %3520 }
 0x690   :  { %v3523_v53 = vpop.eup %3522  ;;  %v533_v56 = vmul.f32 %v3521_v50, %v3779_v12 }
 0x691   :  { %v644_v60 = vmul.f32 %v3523_v53, %v642_v57 }
 0x6f2   :  { %v536_v51 = vpop.permute.xlu1 %535 }
 0x6f3   :  { %v538_v52 = vmul.f32 %v3521_v50, %v536_v51 }
 0x6f4   :  { %v647_v54 = vpop.permute.xlu0 %646 }
 0x6f5   :  { %540 = vrot.lane.b32.xlu1 %v538_v52, %s3665_s26  ;;  %v649_v55 = vmul.f32 %v3523_v53, %v647_v54 }
 0x6f7   :  { %651 = vrot.lane.b32.xlu0 %v649_v55, %s3665_s26 }
 0x767   :  { %v541_v58 = vpop.permute.xlu1 %540 }
 0x768   :  { %v3820_v59 = vadd.f32 %v541_v58, %v533_v56 }
 0x769   :  { %v652_v61 = vpop.permute.xlu0 %651 }
 0x76a   :  { %3524 = vtanh.f32 %v3820_v59  ;;  %v3823_v62 = vadd.f32 %v652_v61, %v644_v60 }
 0x76c   :  { %3526 = vtanh.f32 %v3823_v62  ;;  %v860_v44 = vrot.slane %v3823_v62, 6 }
 0x774   :  { %v3525_v63 = vpop.eup %3524 }
 0x775   :  { %546 = vrot.lane.b32.xlu1 %v3525_v63, %s3664_s0 }
 0x776   :  { %v3527_v2 = vpop.eup %3526 }
 0x777   :  { %657 = vrot.lane.b32.xlu0 %v3527_v2, %s3664_s0 }
 0x7e7   :  { %v547_v3 = vpop.permute.xlu1 %546 }
 0x7e8   :  { %v3828_v4 = vmul.f32 %v3521_v50, %v547_v3 }
 0x7e9   :  { %v658_v7 = vpop.permute.xlu0 %657 }
 0x7ea   :  { %v665_v6 = vrot.slane %v3828_v4, 4  ;;  %v660_v8 = vmul.f32 %v3523_v53, %v658_v7 }
 0x7ec   :  { %666 = vrot.lane.b32.xlu0 %v665_v6, %s3664_s0  ;;  %662 = vrot.lane.b32.xlu1 %v660_v8, %s3665_s26  ;;  %v773_v9 = vrot.slane %v660_v8, 4 }
 0x7f0   :  { %774 = vrot.lane.b32.xlu1 %v773_v9, %s3665_s26 }
 0x85e   :  { %v667_v11 = vpop.permute.xlu0 %666  ;;  %v663_v12 = vpop.permute.xlu1 %662 }
 0x85f   :  { %v669_v14 = vsel %vm128_vm2, %v663_v12, %v667_v11 }
 0x860   :  { %v671_v16 = vrot.slane %v669_v14, 4 }
 0x862   :  { %v775_v17 = vpop.permute.xlu1 %774  ;;  %3069 = vmatmul.mubr.msk.f32.vlgmr.msra.gmra.mrb[6].mxu0 %vm236_vm3, %v671_v16 }
 0x863   :  { %3080 = vmatmul.mubr.msk.f32.vlgmr.msra.gmra.mrb[6].mxu1 %vm128_vm2, %v775_v17  ;;  %3372 = vmatpush3.bf16.msra.mxu0 %v3697_v5 }
 0x864   :  { %3360 = vmatpush3.bf16.msra.mxu1 %v3733_v32  ;;  %3373 = vmatprep.subr.bf16.mxu0 %v3661_v0 }
 0x865   :  { %3361 = vmatprep.subr.bf16.mxu1 %v3661_v0  ;;  %3098 = vmatprep.mubr.msk.f32.mxu1 %vm3662_vm0, %v3663_v1 }
 0x866   :  { %3109 = vmatprep.mubr.msk.f32.mxu0 %vm3662_vm0, %v3663_v1 }
 0x867   :  { %3375 = vmatpush3.bf16.msra.mxu0 %v3708_v10 }
 0x868   :  { %3363 = vmatpush3.bf16.msra.mxu1 %v3736_v34  ;;  %3376 = vmatprep.subr.bf16.mxu0 %v3661_v0 }
 0x869   :  { %3364 = vmatprep.subr.bf16.mxu1 %v3661_v0 }
 0x86c   :  { %3366 = vmatpush3.bf16.msra.mxu1 %v3740_v37 }
 0x86d   :  { %3367 = vmatprep.subr.bf16.mxu1 %v3661_v0 }
 0x870   :  { %3369 = vmatpush3.bf16.msra.mxu1 %v3745_v41 }
 0x871   :  { %3388 = vmatprep.subr.bf16.mxu1 %v3661_v0 }
 0x935   :  { %v740_v18 = vpop.f32.mrb[6].mxu0 }
 0x936   :  { %v741_v19 = vadd.f32 %v3770_v46, %v740_v18  ;;  %v3070_v21 = vpop.f32.mrb[7].mxu0  ;;  %v844_v22 = vpop.f32.mrb[6].mxu1 }
 0x937   :  { %v849_v23 = vrot.slane %v844_v22, 2  ;;  %v3081_v24 = vpop.f32.mrb[7].mxu1 }
 0x938   :  { %3528 = vtanh.f32 %v741_v19  ;;  %v2782_v28 = vmul.f32 -1.442695, %v741_v19 }
 0x939   :  { %v851_v25 = vadd.f32 %v849_v23, %v3725_v15 }
 0x93b   :  { %3530 = vtanh.f32 %v851_v25  ;;  %v2784_v29 = vmul.f32 -1.442695, %v851_v25 }
 0x93c   :  { %3532 = vpow2.f32 %v2782_v28 }
 0x93d   :  { %3534 = vpow2.f32 %v2784_v29 }
 0x942   :  { %v3529_v26 = vpop.eup %3528 }
 0x943   :  { %753 = vrot.lane.b32.xlu0 %v3529_v26, %s3664_s0 }
 0x945   :  { %v3531_v27 = vpop.eup %3530 }
 0x946   :  { %864 = vrot.lane.b32.xlu1 %v3531_v27, %s3664_s0  ;;  %v3533_v30 = vpop.eup %3532 }
 0x947   :  { %v3535_v31 = vpop.eup %3534  ;;  %v747_v33 = vadd.f32 1.0, %v3533_v30 }
 0x948   :  { %v855_v35 = vadd.f32 1.0, %v3535_v31 }
 0x949   :  { %3536 = vrcp.f32 %v747_v33 }
 0x94a   :  { %3538 = vrcp.f32 %v855_v35 }
 0x953   :  { %v3537_v36 = vpop.eup %3536 }
 0x954   :  { %v3539_v39 = vpop.eup %3538  ;;  %v751_v43 = vmul.f32 %v3537_v36, %v3820_v59 }
 0x955   :  { %v862_v48 = vmul.f32 %v3539_v39, %v860_v44 }
 0x9b5   :  { %v754_v38 = vpop.permute.xlu0 %753 }
 0x9b6   :  { %v756_v15 = vmul.f32 %v3537_v36, %v754_v38 }
 0x9b8   :  { %v865_v40 = vpop.permute.xlu1 %864  ;;  %758 = vrot.lane.b32.xlu0 %v756_v15, %s3665_s26 }
 0x9b9   :  { %v867_v42 = vmul.f32 %v3539_v39, %v865_v40 }
 0x9bb   :  { %869 = vrot.lane.b32.xlu1 %v867_v42, %s3665_s26 }
 0xa2a   :  { %v759_v45 = vpop.permute.xlu0 %758 }
 0xa2b   :  { %v3861_v47 = vadd.f32 %v759_v45, %v751_v43 }
 0xa2d   :  { %3540 = vtanh.f32 %v3861_v47  ;;  %v870_v49 = vpop.permute.xlu1 %869 }
 0xa2e   :  { %v3864_v50 = vadd.f32 %v870_v49, %v862_v48 }
 0xa30   :  { %3542 = vtanh.f32 %v3864_v50  ;;  %v1075_v28 = vrot.slane %v3864_v50, 6 }
 0xa37   :  { %v3541_v51 = vpop.eup %3540 }
 0xa38   :  { %764 = vrot.lane.b32.xlu0 %v3541_v51, %s3664_s0 }
 0xa3a   :  { %v3543_v52 = vpop.eup %3542 }
 0xa3b   :  { %875 = vrot.lane.b32.xlu1 %v3543_v52, %s3664_s0 }
 0xaaa   :  { %v765_v53 = vpop.permute.xlu0 %764 }
 0xaab   :  { %v3869_v54 = vmul.f32 %v3537_v36, %v765_v53 }
 0xaad   :  { %v883_v55 = vrot.slane %v3869_v54, 2  ;;  %v876_v56 = vpop.permute.xlu1 %875 }
 0xaae   :  { %v878_v57 = vmul.f32 %v3539_v39, %v876_v56 }
 0xaaf   :  { %884 = vrot.lane.b32.xlu1 %v883_v55, %s3664_s0 }
 0xab0   :  { %880 = vrot.lane.b32.xlu0 %v878_v57, %s3665_s26  ;;  %v991_v58 = vrot.slane %v878_v57, 6 }
 0xab4   :  { %992 = vrot.lane.b32.xlu0 %v991_v58, %s3665_s26 }
 0xb21   :  { %v885_v59 = vpop.permute.xlu1 %884 }
 0xb22   :  { %v881_v60 = vpop.permute.xlu0 %880 }
 0xb23   :  { %v887_v61 = vsel %vm128_vm2, %v881_v60, %v885_v59 }
 0xb24   :  { %v889_v62 = vrot.slane %v887_v61, 6 }
 0xb26   :  { %3099 = vmatmul.mubr.msk.f32.vlgmr.msra.gmra.mrb[8].mxu1 %vm236_vm3, %v889_v62  ;;  %v993_v63 = vpop.permute.xlu0 %992 }
 0xb27   :  { %3110 = vmatmul.mubr.msk.f32.vlgmr.msra.gmra.mrb[8].mxu0 %vm128_vm2, %v993_v63  ;;  %3390 = vmatpush3.bf16.msra.mxu1 %v3697_v5 }
 0xb28   :  { %3378 = vmatpush3.bf16.msra.mxu0 %v3733_v32  ;;  %3391 = vmatprep.subr.bf16.mxu1 %v3661_v0 }
 0xb29   :  { %3379 = vmatprep.subr.bf16.mxu0 %v3661_v0  ;;  %3139 = vmatprep.mubr.msk.f32.mxu1 %vm3662_vm0, %v3663_v1 }
 0xb2a   :  { %3128 = vmatprep.mubr.msk.f32.mxu0 %vm3662_vm0, %v3663_v1 }
 0xb2b   :  { %3393 = vmatpush3.bf16.msra.mxu1 %v3708_v10 }
 0xb2c   :  { %3381 = vmatpush3.bf16.msra.mxu0 %v3736_v34  ;;  %3394 = vmatprep.subr.bf16.mxu1 %v3661_v0 }
 0xb2d   :  { %3382 = vmatprep.subr.bf16.mxu0 %v3661_v0 }
 0xb30   :  { %3384 = vmatpush3.bf16.msra.mxu0 %v3740_v37 }
 0xb31   :  { %3385 = vmatprep.subr.bf16.mxu0 %v3661_v0 }
 0xb34   :  { %3387 = vmatpush3.bf16.msra.mxu0 %v3745_v41 }
 0xb35   :  { %3406 = vmatprep.subr.bf16.mxu0 %v3661_v0 }
 0xbf9   :  { %v958_v2 = vpop.f32.mrb[8].mxu1 }
 0xbfa   :  { %v959_v3 = vadd.f32 %v3770_v46, %v958_v2  ;;  %v3100_v6 = vpop.f32.mrb[9].mxu1  ;;  %v1062_v7 = vpop.f32.mrb[8].mxu0 }
 0xbfb   :  { %v1066_v8 = vadd.f32 %v1062_v7, %v3723_v13  ;;  %v3111_v9 = vpop.f32.mrb[9].mxu0 }
 0xbfc   :  { %3544 = vtanh.f32 %v959_v3  ;;  %v2786_v14 = vmul.f32 -1.442695, %v959_v3 }
 0xbfd   :  { %3546 = vtanh.f32 %v1066_v8  ;;  %v2788_v16 = vmul.f32 -1.442695, %v1066_v8 }
 0xbfe   :  { %3548 = vpow2.f32 %v2786_v14 }
 0xbff   :  { %3550 = vpow2.f32 %v2788_v16 }
 0xc06   :  { %v3545_v11 = vpop.eup %3544 }
 0xc07   :  { %v3547_v12 = vpop.eup %3546  ;;  %971 = vrot.lane.b32.xlu1 %v3545_v11, %s3664_s0 }
 0xc08   :  { %1079 = vrot.lane.b32.xlu0 %v3547_v12, %s3664_s0  ;;  %v3549_v17 = vpop.eup %3548 }
 0xc09   :  { %v3551_v18 = vpop.eup %3550  ;;  %v965_v19 = vadd.f32 1.0, %v3549_v17 }
 0xc0a   :  { %v1070_v21 = vadd.f32 1.0, %v3551_v18 }
 0xc0b   :  { %3552 = vrcp.f32 %v965_v19 }
 0xc0c   :  { %3554 = vrcp.f32 %v1070_v21 }
 0xc15   :  { %v3553_v22 = vpop.eup %3552 }
 0xc16   :  { %v3555_v24 = vpop.eup %3554  ;;  %v969_v29 = vmul.f32 %v3553_v22, %v3861_v47 }
 0xc17   :  { %v1077_v31 = vmul.f32 %v3555_v24, %v1075_v28 }
 0xc79   :  { %v972_v23 = vpop.permute.xlu1 %971 }
 0xc7a   :  { %v974_v25 = vmul.f32 %v3553_v22, %v972_v23  ;;  %v1080_v26 = vpop.permute.xlu0 %1079 }
 0xc7b   :  { %v1082_v27 = vmul.f32 %v3555_v24, %v1080_v26 }
 0xc7c   :  { %976 = vrot.lane.b32.xlu1 %v974_v25, %s3665_s26 }
 0xc7d   :  { %1084 = vrot.lane.b32.xlu0 %v1082_v27, %s3665_s26 }
 0xcee   :  { %v977_v30 = vpop.permute.xlu1 %976 }
 0xcef   :  { %v3902_v33 = vadd.f32 %v977_v30, %v969_v29  ;;  %v1085_v35 = vpop.permute.xlu0 %1084 }
 0xcf0   :  { %v3904_v36 = vadd.f32 %v1085_v35, %v1077_v31 }
 0xcf1   :  { %3556 = vtanh.f32 %v3902_v33 }
 0xcf2   :  { %3558 = vtanh.f32 %v3904_v36  ;;  %v1288_v11 = vrot.slane %v3904_v36, 6 }
 0xcfb   :  { %v3557_v38 = vpop.eup %3556 }
 0xcfc   :  { %v3559_v15 = vpop.eup %3558  ;;  %982 = vrot.lane.b32.xlu1 %v3557_v38, %s3664_s0 }
 0xcfd   :  { %1090 = vrot.lane.b32.xlu0 %v3559_v15, %s3664_s0 }
 0xd6e   :  { %v983_v39 = vpop.permute.xlu1 %982 }
 0xd6f   :  { %v3910_v40 = vmul.f32 %v3553_v22, %v983_v39  ;;  %v1091_v42 = vpop.permute.xlu0 %1090 }
 0xd70   :  { %v1093_v43 = vmul.f32 %v3555_v24, %v1091_v42 }
 0xd71   :  { %1098 = vrot.lane.b32.xlu0 %v3910_v40, %s3664_s0 }
 0xd72   :  { %1095 = vrot.lane.b32.xlu1 %v1093_v43, %s3665_s26 }
 0xde3   :  { %v1099_v44 = vpop.permute.xlu0 %1098 }
 0xde4   :  { %v1096_v45 = vpop.permute.xlu1 %1095 }
 0xde5   :  { %v1101_v47 = vsel %vm128_vm2, %v1096_v45, %v1099_v44  ;;  %3140 = vmatmul.mubr.msk.f32.vlgmr.msra.gmra.mrb[10].mxu1 %vm128_vm2, %v1096_v45 }
 0xde6   :  { %3129 = vmatmul.mubr.msk.f32.vlgmr.msra.gmra.mrb[10].mxu0 %vm236_vm3, %v1101_v47  ;;  %3396 = vmatpush3.bf16.msra.mxu1 %v3733_v32 }
 0xde7   :  { %3397 = vmatprep.subr.bf16.mxu1 %v3661_v0  ;;  %3408 = vmatpush3.bf16.msra.mxu0 %v3697_v5 }
 0xde8   :  { %3409 = vmatprep.subr.bf16.mxu0 %v3661_v0  ;;  %3158 = vmatprep.mubr.msk.f32.mxu1 %vm3662_vm0, %v3663_v1 }
 0xde9   :  { %3169 = vmatprep.mubr.msk.f32.mxu0 %vm3662_vm0, %v3663_v1 }
 0xdea   :  { %3399 = vmatpush3.bf16.msra.mxu1 %v3736_v34 }
 0xdeb   :  { %3400 = vmatprep.subr.bf16.mxu1 %v3661_v0  ;;  %3411 = vmatpush3.bf16.msra.mxu0 %v3708_v10 }
 0xdec   :  { %3412 = vmatprep.subr.bf16.mxu0 %v3661_v0 }
 0xdee   :  { %3402 = vmatpush3.bf16.msra.mxu1 %v3740_v37 }
 0xdef   :  { %3403 = vmatprep.subr.bf16.mxu1 %v3661_v0 }
 0xdf2   :  { %3405 = vmatpush3.bf16.msra.mxu1 %v3745_v41 }
 0xdf3   :  { %3424 = vmatprep.subr.bf16.mxu1 %v3661_v0 }
 0xeb8   :  { %v1272_v48 = vpop.f32.mrb[10].mxu1 }
 0xeb9   :  { %v1277_v49 = vrot.slane %v1272_v48, 6  ;;  %v1171_v50 = vpop.f32.mrb[10].mxu0  ;;  %v3141_v51 = vpop.f32.mrb[11].mxu1 }
 0xeba   :  { %v1172_v52 = vadd.f32 %v3770_v46, %v1171_v50  ;;  %v3130_v53 = vpop.f32.mrb[11].mxu0 }
 0xebb   :  { %v1279_v55 = vadd.f32 %v1277_v49, %v3723_v13 }
 0xebc   :  { %3560 = vtanh.f32 %v1172_v52  ;;  %v2790_v58 = vmul.f32 -1.442695, %v1172_v52 }
 0xebd   :  { %3562 = vtanh.f32 %v1279_v55  ;;  %v2792_v59 = vmul.f32 -1.442695, %v1279_v55 }
 0xebe   :  { %3564 = vpow2.f32 %v2790_v58 }
 0xebf   :  { %3566 = vpow2.f32 %v2792_v59 }
 0xec6   :  { %v3561_v56 = vpop.eup %3560 }
 0xec7   :  { %v3563_v57 = vpop.eup %3562  ;;  %1184 = vrot.lane.b32.xlu1 %v3561_v56, %s3664_s0 }
 0xec8   :  { %1292 = vrot.lane.b32.xlu0 %v3563_v57, %s3664_s0  ;;  %v3565_v60 = vpop.eup %3564 }
 0xec9   :  { %v3567_v61 = vpop.eup %3566  ;;  %v1178_v62 = vadd.f32 1.0, %v3565_v60 }
 0xeca   :  { %v1283_v63 = vadd.f32 1.0, %v3567_v61 }
 0xecb   :  { %3568 = vrcp.f32 %v1178_v62 }
 0xecc   :  { %3570 = vrcp.f32 %v1283_v63 }
 0xed5   :  { %v3569_v2 = vpop.eup %3568 }
 0xed6   :  { %v3571_v6 = vpop.eup %3570  ;;  %v1182_v12 = vmul.f32 %v3569_v2, %v3902_v33 }
 0xed7   :  { %v1290_v16 = vmul.f32 %v3571_v6, %v1288_v11 }
 0xf39   :  { %v1185_v3 = vpop.permute.xlu1 %1184 }
 0xf3a   :  { %v1187_v7 = vmul.f32 %v3569_v2, %v1185_v3  ;;  %v1293_v8 = vpop.permute.xlu0 %1292 }
 0xf3b   :  { %v1295_v9 = vmul.f32 %v3571_v6, %v1293_v8 }
 0xf3c   :  { %1189 = vrot.lane.b32.xlu1 %v1187_v7, %s3665_s26 }
 0xf3d   :  { %1297 = vrot.lane.b32.xlu0 %v1295_v9, %s3665_s26 }
 0xfae   :  { %v1190_v14 = vpop.permute.xlu1 %1189 }
 0xfaf   :  { %v3942_v17 = vadd.f32 %v1190_v14, %v1182_v12  ;;  %v1298_v18 = vpop.permute.xlu0 %1297 }
 0xfb0   :  { %v3944_v19 = vadd.f32 %v1298_v18, %v1290_v16 }
 0xfb1   :  { %3572 = vtanh.f32 %v3942_v17 }
 0xfb2   :  { %3574 = vtanh.f32 %v3944_v19  ;;  %v1506_v60 = vrot.slane %v3944_v19, 6 }
 0xfbb   :  { %v3573_v21 = vpop.eup %3572 }
 0xfbc   :  { %v3575_v22 = vpop.eup %3574  ;;  %1195 = vrot.lane.b32.xlu1 %v3573_v21, %s3664_s0 }
 0xfbd   :  { %1303 = vrot.lane.b32.xlu0 %v3575_v22, %s3664_s0 }
0x102e   :  { %v1196_v23 = vpop.permute.xlu1 %1195 }
0x102f   :  { %v3950_v24 = vmul.f32 %v3569_v2, %v1196_v23  ;;  %v1304_v25 = vpop.permute.xlu0 %1303 }
0x1030   :  { %v1306_v26 = vmul.f32 %v3571_v6, %v1304_v25 }
0x1031   :  { %v1311_v27 = vrot.slane %v3950_v24, 6 }
0x1032   :  { %1308 = vrot.lane.b32.xlu1 %v1306_v26, %s3665_s26  ;;  %v1419_v28 = vrot.slane %v1306_v26, 2 }
0x1033   :  { %1312 = vrot.lane.b32.xlu0 %v1311_v27, %s3664_s0 }
0x1036   :  { %1420 = vrot.lane.b32.xlu1 %v1419_v28, %s3665_s26 }
0x10a4   :  { %v1309_v29 = vpop.permute.xlu1 %1308 }
0x10a5   :  { %v1313_v30 = vpop.permute.xlu0 %1312 }
0x10a6   :  { %v1315_v31 = vsel %vm128_vm2, %v1309_v29, %v1313_v30 }
0x10a7   :  { %v1317_v33 = vrot.slane %v1315_v31, 2 }
0x10a8   :  { %v1421_v35 = vpop.permute.xlu1 %1420 }
0x10a9   :  { %3159 = vmatmul.mubr.msk.f32.vlgmr.msra.gmra.mrb[12].mxu1 %vm236_vm3, %v1317_v33  ;;  %3170 = vmatmul.mubr.msk.f32.vlgmr.msra.gmra.mrb[12].mxu0 %vm128_vm2, %v1421_v35 }
0x10aa   :  { %3414 = vmatpush3.bf16.msra.mxu0 %v3733_v32  ;;  %3426 = vmatpush3.bf16.msra.mxu1 %v3697_v5 }
0x10ab   :  { %3415 = vmatprep.subr.bf16.mxu0 %v3661_v0  ;;  %3427 = vmatprep.subr.bf16.mxu1 %v3661_v0 }
0x10ac   :  { %3188 = vmatprep.mubr.msk.f32.mxu0 %vm3662_vm0, %v3663_v1  ;;  %3199 = vmatprep.mubr.msk.f32.mxu1 %vm3662_vm0, %v3663_v1 }
0x10ae   :  { %3417 = vmatpush3.bf16.msra.mxu0 %v3736_v34  ;;  %3429 = vmatpush3.bf16.msra.mxu1 %v3708_v10 }
0x10af   :  { %3418 = vmatprep.subr.bf16.mxu0 %v3661_v0  ;;  %3430 = vmatprep.subr.bf16.mxu1 %v3661_v0 }
0x10b2   :  { %3420 = vmatpush3.bf16.msra.mxu0 %v3740_v37 }
0x10b3   :  { %3421 = vmatprep.subr.bf16.mxu0 %v3661_v0 }
0x10b6   :  { %3423 = vmatpush3.bf16.msra.mxu0 %v3745_v41 }
0x10b7   :  { %3442 = vmatprep.subr.bf16.mxu0 %v3661_v0 }
0x117c   :  { %v1386_v5 = vpop.f32.mrb[12].mxu1  ;;  %v1490_v36 = vpop.f32.mrb[12].mxu0 }
0x117d   :  { %v1387_v38 = vadd.f32 %v3770_v46, %v1386_v5  ;;  %v1495_v15 = vrot.slane %v1490_v36, 4  ;;  %v3160_v39 = vpop.f32.mrb[13].mxu1  ;;  %v3171_v42 = vpop.f32.mrb[13].mxu0 }
0x117f   :  { %3576 = vtanh.f32 %v1387_v38  ;;  %v1497_v10 = vadd.f32 %v1495_v15, %v3723_v13  ;;  %v2794_v45 = vmul.f32 -1.442695, %v1387_v38 }
0x1181   :  { %3578 = vtanh.f32 %v1497_v10  ;;  %v2796_v47 = vmul.f32 -1.442695, %v1497_v10 }
0x1182   :  { %3580 = vpow2.f32 %v2794_v45 }
0x1183   :  { %3582 = vpow2.f32 %v2796_v47 }
0x1189   :  { %v3577_v43 = vpop.eup %3576 }
0x118a   :  { %1399 = vrot.lane.b32.xlu0 %v3577_v43, %s3664_s0 }
0x118b   :  { %v3579_v44 = vpop.eup %3578 }
0x118c   :  { %1510 = vrot.lane.b32.xlu1 %v3579_v44, %s3664_s0  ;;  %v3581_v48 = vpop.eup %3580 }
0x118d   :  { %v3583_v49 = vpop.eup %3582  ;;  %v1393_v50 = vadd.f32 1.0, %v3581_v48 }
0x118e   :  { %v1501_v51 = vadd.f32 1.0, %v3583_v49 }
0x118f   :  { %3584 = vrcp.f32 %v1393_v50 }
0x1190   :  { %3586 = vrcp.f32 %v1501_v51 }
0x1199   :  { %v3585_v52 = vpop.eup %3584 }
0x119a   :  { %v3587_v56 = vpop.eup %3586  ;;  %v1397_v59 = vmul.f32 %v3585_v52, %v3942_v17 }
0x119b   :  { %v1508_v63 = vmul.f32 %v3587_v56, %v1506_v60 }
0x11fc   :  { %v1400_v53 = vpop.permute.xlu0 %1399 }
0x11fd   :  { %v1402_v55 = vmul.f32 %v3585_v52, %v1400_v53 }
0x11fe   :  { %v1511_v57 = vpop.permute.xlu1 %1510 }
0x11ff   :  { %1404 = vrot.lane.b32.xlu0 %v1402_v55, %s3665_s26  ;;  %v1513_v58 = vmul.f32 %v3587_v56, %v1511_v57 }
0x1201   :  { %1515 = vrot.lane.b32.xlu1 %v1513_v58, %s3665_s26 }
0x1271   :  { %v1405_v61 = vpop.permute.xlu0 %1404 }
0x1272   :  { %v3983_v62 = vadd.f32 %v1405_v61, %v1397_v59 }
0x1273   :  { %v1516_v2 = vpop.permute.xlu1 %1515 }
0x1274   :  { %3588 = vtanh.f32 %v3983_v62  ;;  %v3986_v3 = vadd.f32 %v1516_v2, %v1508_v63 }
0x1276   :  { %3590 = vtanh.f32 %v3986_v3  ;;  %v1724_v43 = vrot.slane %v3986_v3, 6 }
0x127e   :  { %v3589_v6 = vpop.eup %3588 }
0x127f   :  { %1410 = vrot.lane.b32.xlu0 %v3589_v6, %s3664_s0 }
0x1280   :  { %v3591_v7 = vpop.eup %3590 }
0x1281   :  { %1521 = vrot.lane.b32.xlu1 %v3591_v7, %s3664_s0 }
0x12f1   :  { %v1411_v8 = vpop.permute.xlu0 %1410 }
0x12f2   :  { %v3991_v9 = vmul.f32 %v3585_v52, %v1411_v8 }
0x12f3   :  { %v1522_v12 = vpop.permute.xlu1 %1521 }
0x12f4   :  { %v1529_v11 = vrot.slane %v3991_v9, 4  ;;  %v1524_v14 = vmul.f32 %v3587_v56, %v1522_v12 }
0x12f6   :  { %1530 = vrot.lane.b32.xlu1 %v1529_v11, %s3664_s0  ;;  %1526 = vrot.lane.b32.xlu0 %v1524_v14, %s3665_s26  ;;  %v1637_v16 = vrot.slane %v1524_v14, 4 }
0x12fa   :  { %1638 = vrot.lane.b32.xlu0 %v1637_v16, %s3665_s26 }
0x1368   :  { %v1531_v17 = vpop.permute.xlu1 %1530  ;;  %v1527_v18 = vpop.permute.xlu0 %1526 }
0x1369   :  { %v1533_v19 = vsel %vm128_vm2, %v1527_v18, %v1531_v17 }
0x136a   :  { %v1535_v21 = vrot.slane %v1533_v19, 4 }
0x136c   :  { %v1639_v22 = vpop.permute.xlu0 %1638  ;;  %3189 = vmatmul.mubr.msk.f32.vlgmr.msra.gmra.mrb[14].mxu0 %vm236_vm3, %v1535_v21 }
0x136d   :  { %3200 = vmatmul.mubr.msk.f32.vlgmr.msra.gmra.mrb[14].mxu1 %vm128_vm2, %v1639_v22  ;;  %3229 = vmatprep.mubr.msk.f32.mxu0 %vm3662_vm0, %v3663_v1  ;;  %v1856_v22 = vld [vmem:[#allocation3 + $0x80] sm:$0xff] }
0x136e   :  { %3432 = vmatpush3.bf16.msra.mxu1 %v3733_v32  ;;  %3218 = vmatprep.mubr.msk.f32.mxu1 %vm3662_vm0, %v3663_v1 }
0x136f   :  { %3433 = vmatprep.subr.bf16.mxu1 %v3661_v0 }
0x1372   :  { %3435 = vmatpush3.bf16.msra.mxu1 %v3736_v34 }
0x1373   :  { %3436 = vmatprep.subr.bf16.mxu1 %v3661_v0 }
0x1376   :  { %3438 = vmatpush3.bf16.msra.mxu1 %v3740_v37 }
0x1377   :  { %3439 = vmatprep.subr.bf16.mxu1 %v3661_v0 }
0x137a   :  { %3441 = vmatpush3.bf16.msra.mxu1 %v3745_v41 }
0x143f   :  { %v1604_v23 = vpop.f32.mrb[14].mxu0 }
0x1440   :  { %v1605_v25 = vadd.f32 %v3770_v46, %v1604_v23  ;;  %v3190_v26 = vpop.f32.mrb[15].mxu0  ;;  %v1708_v32 = vpop.f32.mrb[14].mxu1 }
0x1441   :  { %v1713_v27 = vrot.slane %v1708_v32, 2  ;;  %v3201_v28 = vpop.f32.mrb[15].mxu1 }
0x1442   :  { %3592 = vtanh.f32 %v1605_v25  ;;  %v2798_v37 = vmul.f32 -1.442695, %v1605_v25  ;;  %v1858_v25 = vld [vmem:[#allocation3 + $0x90] sm:$0xff]  ;;  %v1861_v28 = vld [vmem:[#allocation3 + $0xa8] sm:$0xff] }
0x1443   :  { %v1715_v29 = vadd.f32 %v1713_v27, %v3723_v13  ;;  %v1860_v27 = vld [vmem:[#allocation3 + $0xa0] sm:$0xff] }
0x1445   :  { %3594 = vtanh.f32 %v1715_v29  ;;  %v2800_v31 = vmul.f32 -1.442695, %v1715_v29  ;;  %v3448_v29 = vpack.c.bf16 %v1861_v28, %v1860_v27 }
0x1446   :  { %3596 = vpow2.f32 %v2798_v37 }
0x1447   :  { %3598 = vpow2.f32 %v2800_v31 }
0x144c   :  { %v3593_v34 = vpop.eup %3592 }
0x144d   :  { %1617 = vrot.lane.b32.xlu1 %v3593_v34, %s3664_s0 }
0x144f   :  { %v3595_v30 = vpop.eup %3594 }
0x1450   :  { %1728 = vrot.lane.b32.xlu0 %v3595_v30, %s3664_s0  ;;  %v3597_v41 = vpop.eup %3596 }
0x1451   :  { %v3599_v33 = vpop.eup %3598  ;;  %v1611_v35 = vadd.f32 1.0, %v3597_v41  ;;  %v1863_v41 = vld [vmem:[#allocation3 + $0xb8] sm:$0xff] }
0x1452   :  { %v1719_v5 = vadd.f32 1.0, %v3599_v33 }
0x1453   :  { %3600 = vrcp.f32 %v1611_v35 }
0x1454   :  { %3602 = vrcp.f32 %v1719_v5 }
0x145d   :  { %v3601_v36 = vpop.eup %3600 }
0x145e   :  { %v3603_v15 = vpop.eup %3602  ;;  %v1615_v10 = vmul.f32 %v3601_v36, %v3983_v62 }
0x145f   :  { %v1726_v47 = vmul.f32 %v3603_v15, %v1724_v43 }
0x14bf   :  { %v1618_v38 = vpop.permute.xlu1 %1617 }
0x14c0   :  { %v1620_v13 = vmul.f32 %v3601_v36, %v1618_v38  ;;  %v1871_v38 = vld [vmem:[#allocation3 + $0xf8] sm:$0xff] }
0x14c2   :  { %v1729_v39 = vpop.permute.xlu0 %1728  ;;  %1622 = vrot.lane.b32.xlu1 %v1620_v13, %s3665_s26 }
0x14c3   :  { %v1731_v42 = vmul.f32 %v3603_v15, %v1729_v39  ;;  %v1873_v39 = vld [vmem:[#allocation3 + $0x108] sm:$0xff] }
0x14c5   :  { %1733 = vrot.lane.b32.xlu0 %v1731_v42, %s3665_s26 }
0x1534   :  { %v1623_v44 = vpop.permute.xlu1 %1622 }
0x1535   :  { %v1625_v45 = vadd.f32 %v1623_v44, %v1615_v10  ;;  %v2039_v10 = vlaneseq }
0x1537   :  { %3604 = vtanh.f32 %v1625_v45  ;;  %v1734_v48 = vpop.permute.xlu0 %1733  ;;  %v4057_v43 = vshrl.u32 %v2039_v10, 7 }
0x1538   :  { %v1736_v49 = vadd.f32 %v1734_v48, %v1726_v47 }
0x1539   :  { %v2041_v44 = vadd.s32 8, %v4057_v43  ;;  %vm2297_vm9 = vcmp.eq.s32.totalorder %v4057_v43, 0  ;;  %vm2423_vm10 = vcmp.eq.s32.totalorder %v4057_v43, 1 }
0x153a   :  { %3606 = vtanh.f32 %v1736_v49 }
0x153b   :  { %v2053_v48 = vand.u32 1, %v2041_v44 }
0x153d   :  { %vm4063_vm5 = vcmp.eq.s32.totalorder %v2053_v48, 0  ;;  %vm4073_vm7 = vcmp.eq.s32.totalorder %v2053_v48, 1 }
0x1541   :  { %v3605_v50 = vpop.eup %3604 }
0x1542   :  { %1628 = vrot.lane.b32.xlu1 %v3605_v50, %s3664_s0  ;;  %v2046_v50 = vand.u32 1, %v4057_v43 }
0x1544   :  { %v3607_v51 = vpop.eup %3606  ;;  %vm4067_vm6 = vcmp.eq.s32.totalorder %v2046_v50, 0  ;;  %vm4079_vm8 = vcmp.eq.s32.totalorder %v2046_v50, 1 }
0x1545   :  { %1739 = vrot.lane.b32.xlu0 %v3607_v51, %s3664_s0  ;;  %v2070_v51 = vsub.s32 0, %v4057_v43 }
0x15b4   :  { %v1629_v52 = vpop.permute.xlu1 %1628 }
0x15b5   :  { %v1631_v53 = vmul.f32 %v3601_v36, %v1629_v52  ;;  %v1870_v36 = vld [vmem:[#allocation3 + $0xf0] sm:$0xff] }
0x15b6   :  { %v3456_v13 = vpack.c.bf16 %v1871_v38, %v1870_v36 }
0x15b7   :  { %v1747_v55 = vrot.slane %v1631_v53, 2  ;;  %v1740_v56 = vpop.permute.xlu0 %1739 }
0x15b8   :  { %v1742_v57 = vmul.f32 %v3603_v15, %v1740_v56  ;;  %3457 = vmatprep.subr.bf16.mxu1 %v3456_v13  ;;  %v1872_v15 = vld [vmem:[#allocation3 + $0x100] sm:$0xff] }
0x15b9   :  { %1748 = vrot.lane.b32.xlu0 %v1747_v55, %s3664_s0  ;;  %v3460_v42 = vpack.c.bf16 %v1873_v39, %v1872_v15 }
0x15ba   :  { %1744 = vrot.lane.b32.xlu1 %v1742_v57, %s3665_s26 }
0x162b   :  { %v1749_v58 = vpop.permute.xlu0 %1748 }
0x162c   :  { %v1745_v59 = vpop.permute.xlu1 %1744 }
0x162d   :  { %v1751_v60 = vsel %vm128_vm2, %v1745_v59, %v1749_v58 }
0x162e   :  { %v1753_v61 = vrot.slane %v1751_v60, 6  ;;  %v2805_v60 = vld [vmem:[#allocation3 + $0xc0] ss:$0 sm:$0xff] }
0x1630   :  { %3219 = vmatmul.mubr.msk.f32.vlgmr.msra.gmra.mrb[16].mxu1 %vm236_vm3, %v1753_v61 }
0x1631   :  { %3459 = vmatpush3.bf16.msra.mxu1 %v3456_v13 }
0x1632   :  { %3461 = vmatprep.subr.bf16.mxu1 %v3460_v42 }
0x1635   :  { %3463 = vmatpush3.bf16.msra.mxu1 %v3460_v42 }
0x1636   :  { %3464 = vmatprep.subr.bf16.mxu1 %v3661_v0 }
0x1703   :  { %v1822_v62 = vpop.f32.mrb[16].mxu1 }
0x1704   :  { %v1823_v63 = vadd.f32 %v3770_v46, %v1822_v62  ;;  %v3220_v2 = vpop.f32.mrb[17].mxu1 }
0x1706   :  { %3608 = vtanh.f32 %v1823_v63  ;;  %v2802_v6 = vmul.f32 -1.442695, %v1823_v63 }
0x1708   :  { %3610 = vpow2.f32 %v2802_v6 }
0x1710   :  { %v3609_v3 = vpop.eup %3608 }
0x1711   :  { %1835 = vrot.lane.b32.xlu1 %v3609_v3, %s3664_s0 }
0x1712   :  { %v3611_v7 = vpop.eup %3610 }
0x1713   :  { %v1829_v8 = vadd.f32 1.0, %v3611_v7 }
0x1715   :  { %3612 = vrcp.f32 %v1829_v8 }
0x171f   :  { %v3613_v11 = vpop.eup %3612 }
0x1720   :  { %v1833_v46 = vmul.f32 %v3613_v11, %v1625_v45  ;;  %v2803_v45 = vld [vmem:[#allocation3 + $0x98] ss:$0 sm:$0xff] }
0x1783   :  { %v1836_v12 = vpop.permute.xlu1 %1835 }
0x1784   :  { %v1838_v14 = vmul.f32 %v3613_v11, %v1836_v12 }
0x1786   :  { %1840 = vrot.lane.b32.xlu0 %v1838_v14, %s3665_s26 }
0x178a   :  { %335 = vrot.lane.b32.xlu0 %v3787_v20, %s3665_s26 }
0x178e   :  { %769 = vrot.lane.b32.xlu0 %v3869_v54, %s3665_s26  ;;  %v1855_v54 = vld [vmem:[#allocation3 + $0x78] sm:$0xff] }
0x178f   :  { %v3443_v23 = vpack.c.bf16 %v1856_v22, %v1855_v54 }
0x1791   :  { %3444 = vmatpush3.bf16.msra.mxu0 %v3443_v23 }
0x1792   :  { %1200 = vrot.lane.b32.xlu0 %v3950_v24, %s3665_s26  ;;  %v1857_v24 = vld [vmem:[#allocation3 + $0x88] sm:$0xff]  ;;  %3445 = vmatprep.subr.bf16.mxu0 %v3661_v0 }
0x1793   :  { %v3446_v32 = vpack.c.bf16 %v1858_v25, %v1857_v24 }
0x1795   :  { %3447 = vmatpush3.bf16.msra.mxu0 %v3446_v32 }
0x1796   :  { %1633 = vrot.lane.b32.xlu0 %v1631_v53, %s3665_s26  ;;  %3449 = vmatprep.subr.bf16.mxu0 %v3448_v29  ;;  %v2078_v53 = vsub.s32 1, %v4057_v43  ;;  %v2507_v43 = vld [vmem:[#allocation3 + $0x140] sm:$0xff] }
0x17f8   :  { %v1841_v16 = vpop.permute.xlu0 %1840 }
0x17f9   :  { %v1843_v17 = vadd.f32 %v1841_v16, %v1833_v46  ;;  %v4091_v16 = vld [vmem:[#allocation3 + $0x110] sm:$0xff] }
0x17fb   :  { %3614 = vtanh.f32 %v1843_v17 }
0x17fc   :  { %v336_v18 = vpop.permute.xlu0 %335 }
0x17fd   :  { %339 = vst.msk [vmem:[#allocation2] sm:$0x3] %vm338_vm4, %v336_v18 }
0x1800   :  { %v770_v19 = vpop.permute.xlu0 %769 }
0x1801   :  { %772 = vst.msk [vmem:[#allocation2 + $0x4] sm:$0x3] %vm338_vm4, %v770_v19 }
0x1804   :  { %v1201_v20 = vpop.permute.xlu0 %1200 }
0x1805   :  { %v3615_v21 = vpop.eup %3614  ;;  %1203 = vst.msk [vmem:[#allocation2 + $0x8] sm:$0x3] %vm338_vm4, %v1201_v20 }
0x1806   :  { %1846 = vrot.lane.b32.xlu1 %v3615_v21, %s3664_s0 }
0x1808   :  { %v1634_v26 = vpop.permute.xlu0 %1633 }
0x1809   :  { %1636 = vst.msk [vmem:[#allocation2 + $0xc] sm:$0x3] %vm338_vm4, %v1634_v26 }
0x180a   :  { %551 = vrot.lane.b32.xlu1 %v3828_v4, %s3665_s26 }
0x180e   :  { %987 = vrot.lane.b32.xlu1 %v3910_v40, %s3665_s26  ;;  %v1862_v40 = vld [vmem:[#allocation3 + $0xb0] sm:$0xff] }
0x1812   :  { %1415 = vrot.lane.b32.xlu1 %v3991_v9, %s3665_s26  ;;  %v3452_v9 = vpack.c.bf16 %v1863_v41, %v1862_v40 }
0x1878   :  { %v1847_v34 = vpop.permute.xlu1 %1846 }
0x1879   :  { %v1849_v30 = vmul.f32 %v3613_v11, %v1847_v34 }
0x187b   :  { %1851 = vrot.lane.b32.xlu1 %v1849_v30, %s3665_s26 }
0x187c   :  { %v552_v37 = vpop.permute.xlu1 %551 }
0x187d   :  { %554 = vst.msk [vmem:[#allocation2 + $0x2] sm:$0x3] %vm338_vm4, %v552_v37 }
0x1880   :  { %v988_v31 = vpop.permute.xlu1 %987 }
0x1881   :  { %990 = vst.msk [vmem:[#allocation2 + $0x6] sm:$0x3] %vm338_vm4, %v988_v31 }
0x1884   :  { %v1416_v4 = vpop.permute.xlu1 %1415 }
0x1885   :  { %1418 = vst.msk [vmem:[#allocation2 + $0xa] sm:$0x3] %vm338_vm4, %v1416_v4 }
0x1888   :  { %v1952_v35 = vld [vmem:[#allocation2] sm:$0xff] }
0x18ed   :  { %v1852_v33 = vpop.permute.xlu1 %1851 }
0x18ee   :  { %1854 = vst.msk [vmem:[#allocation2 + $0xe] sm:$0x3] %vm338_vm4, %v1852_v33  ;;  %3230 = vmatmul.mubr.msk.f32.vlgmr.msra.gmra.mrb[16].mxu0 %vm128_vm2, %v1852_v33 }
0x18ef   :  { %3451 = vmatpush3.bf16.msra.mxu0 %v3448_v29  ;;  %3240 = vmatprep.mubr.msk.f32.mxu0 %vm128_vm2, %v1952_v35 }
0x18f0   :  { %3453 = vmatprep.subr.bf16.mxu0 %v3452_v9 }
0x18f3   :  { %3455 = vmatpush3.bf16.msra.mxu0 %v3452_v9 }
0x18f4   :  { %3254 = vmatprep.subr.mxu0 %v4091_v16 }
0x18f5   :  { %v1953_v5 = vld [vmem:[#allocation2 + $0x8] sm:$0xff] }
0x18f6   :  { %3241 = vmatmul.mubr.msk.f32.vlgmr.msra.gmra.mrb[18].mxu0 %vm128_vm2, %v1953_v5 }
0x18f7   :  { %3255 = vmatpush3.msra.mxu0 %v4091_v16 }
0x18f8   :  { %3259 = vmatprep.subr.mxu0 %v4091_v16 }
0x19c1   :  { %v1947_v47 = vpop.f32.mrb[16].mxu0 }
0x19c2   :  { %v1948_v49 = vadd.f32 %v2803_v45, %v1947_v47  ;;  %v3231_v52 = vpop.f32.mrb[17].mxu0 }
0x19c4   :  { %v1951_v55 = vmul.f32 0.5, %v1948_v49 }
0x19c6   :  { %v2071_v58 = vrot.slane %v1951_v55, %v2070_v51  ;;  %v2079_v59 = vrot.slane %v1951_v55, %v2078_v53 }
0x19c8   :  { %v2073_v61 = vsel %vm4063_vm5, %v2071_v58, 0.0  ;;  %v2072_v63 = vsel %vm4067_vm6, %v2071_v58, 0.0 }
0x19c9   :  { %v3242_v2 = vpop.f32.mrb[18].mxu0  ;;  %v2081_v8 = vsel %vm4073_vm7, %v2079_v59, %v2073_v61  ;;  %v2080_v14 = vsel %vm4079_vm8, %v2079_v59, %v2072_v63 }
0x19ca   :  { %v2036_v6 = vadd.f32 %v3242_v2, %v2805_v60  ;;  %v2030_v7 = vpop.f32.mrb[19].mxu0 }
0x19cb   :  { %v2031_v11 = vadd.f32 %v2805_v60, %v2030_v7 }
0x19cc   :  { %v2083_v12 = vmul.f32 %v2081_v8, %v2036_v6  ;;  %2282 = vrot.lane.b32.xlu1 %v2036_v6, %s3666_s27 }
0x19cd   :  { %v2082_v46 = vmul.f32 %v2080_v14, %v2031_v11  ;;  %2280 = vrot.lane.b32.xlu0 %v2031_v11, %s3666_s27 }
0x19cf   :  { %3251 = vmatprep.mubr.msk.f32.mxu1 %vm128_vm2, %v2082_v46 }
0x19d0   :  { %3252 = vmatmul.mubr.msk.f32.vlgmr.msra.gmra.mrb[18].mxu1 %vm128_vm2, %v2083_v12 }
0x19d1   :  { %3272 = vmatprep.mubr.msk.f32.mxu1 %vm3662_vm0, %v3663_v1 }
0x1aa3   :  { %v3253_v17 = vpop.f32.mrb[18].mxu1 }
0x1aa4   :  { %v2166_v18 = vsel %vm4063_vm5, %v3253_v17, -1e+30  ;;  %v2300_v19 = vsel %vm4073_vm7, %v3253_v17, -1e+30  ;;  %v2156_v20 = vpop.f32.mrb[19].mxu1 }
0x1aa5   :  { %v2168_v21 = vsel %vm46_vm1, %v2166_v18, -inf  ;;  %v2302_v54 = vsel %vm46_vm1, %v2300_v19, -inf  ;;  %v2165_v22 = vsel %vm4067_vm6, %v2156_v20, -1e+30  ;;  %v2299_v24 = vsel %vm4079_vm8, %v2156_v20, -1e+30 }
0x1aa6   :  { %v2167_v23 = vsel %vm46_vm1, %v2165_v22, -inf  ;;  %v2301_v25 = vsel %vm46_vm1, %v2299_v24, -inf }
0x1aa7   :  { %v2169_v26 = vmax.f32 %v2167_v23, %v2168_v21  ;;  %v2303_v32 = vmax.f32 %v2301_v25, %v2302_v54  ;;  %v1865_v54 = vld [vmem:[#allocation3 + $0xc8] sm:$0xff]  ;;  %v1867_v23 = vld [vmem:[#allocation3 + $0xd8] sm:$0xff]  ;;  %v1868_v25 = vld [vmem:[#allocation3 + $0xe0] sm:$0xff] }
0x1aa9   :  { %v2170_v27 = vrot.slane %v2169_v26, 4  ;;  %v2304_v28 = vrot.slane %v2303_v32, 4 }
0x1aab   :  { %v2171_v29 = vmax.f32 %v2169_v26, %v2170_v27  ;;  %v2305_v34 = vmax.f32 %v2303_v32, %v2304_v28  ;;  %v3468_v26 = vpack.c.bf16 %v1868_v25, %v1867_v23  ;;  %v2503_v32 = vld [vmem:[#allocation3 + $0x120] sm:$0xff]  ;;  %v2283_v28 = vpop.permute.xlu1 %2282  ;;  %v2747_v25 = vand.u32 127, %v2039_v10 }
0x1aad   :  { %v2172_v30 = vrot.slane %v2171_v29, 2  ;;  %v2306_v37 = vrot.slane %v2305_v34, 2  ;;  %vm2749_vm12 = vcmp.eq.s32.totalorder %v2747_v25, 1  ;;  %vm2748_vm13 = vcmp.eq.s32.totalorder %v2747_v25, 0 }
0x1aaf   :  { %v2173_v31 = vmax.f32 %v2171_v29, %v2172_v30  ;;  %v2307_v4 = vmax.f32 %v2305_v34, %v2306_v37  ;;  %v2281_v34 = vpop.permute.xlu0 %2280 }
0x1ab1   :  { %v2174_v40 = vrot.slane %v2173_v31, 1  ;;  %v2308_v41 = vrot.slane %v2307_v4, 1 }
0x1ab3   :  { %v2175_v9 = vmax.f32 %v2173_v31, %v2174_v40  ;;  %v2309_v33 = vmax.f32 %v2307_v4, %v2308_v41 }
0x1ab5   :  { %v2176_v35 = vsub.f32 %v2165_v22, %v2175_v9  ;;  %v2177_v5 = vsub.f32 %v2166_v18, %v2175_v9  ;;  %v2310_v36 = vsub.f32 %v2299_v24, %v2309_v33  ;;  %v2311_v38 = vsub.f32 %v2300_v19, %v2309_v33  ;;  %v1866_v22 = vld [vmem:[#allocation3 + $0xd0] sm:$0xff] }
0x1ab6   :  { %v3465_v24 = vpack.c.bf16 %v1866_v22, %v1865_v54 }
0x1ab7   :  { %v2178_v13 = vmul.f32 1.442695, %v2176_v35  ;;  %v2180_v15 = vmul.f32 1.442695, %v2177_v5  ;;  %v2312_v39 = vmul.f32 1.442695, %v2310_v36 }
0x1ab8   :  { %v2314_v42 = vmul.f32 1.442695, %v2311_v38  ;;  %3466 = vmatpush3.bf16.msra.mxu1 %v3465_v24 }
0x1ab9   :  { %3616 = vpow2.f32 %v2178_v13  ;;  %3467 = vmatprep.subr.bf16.mxu1 %v3661_v0 }
0x1aba   :  { %3618 = vpow2.f32 %v2180_v15 }
0x1abb   :  { %3620 = vpow2.f32 %v2312_v39 }
0x1abc   :  { %3622 = vpow2.f32 %v2314_v42  ;;  %3469 = vmatpush3.bf16.msra.mxu1 %v3468_v26 }
0x1abd   :  { %3476 = vmatprep.subr.bf16.mxu1 %v3661_v0 }
0x1ac3   :  { %v3617_v44 = vpop.eup %3616 }
0x1ac4   :  { %v3619_v45 = vpop.eup %3618  ;;  %v2182_v47 = vsel %vm4067_vm6, %v3617_v44, 0.0 }
0x1ac5   :  { %v3621_v48 = vpop.eup %3620  ;;  %v2183_v49 = vsel %vm4063_vm5, %v3619_v45, 0.0  ;;  %v2184_v50 = vsel %vm46_vm1, %v2182_v47, 0.0 }
0x1ac6   :  { %v3623_v51 = vpop.eup %3622  ;;  %v2185_v52 = vsel %vm46_vm1, %v2183_v49, 0.0  ;;  %v2316_v53 = vsel %vm4079_vm8, %v3621_v48, 0.0 }
0x1ac7   :  { %v2186_v55 = vadd.f32 %v2185_v52, %v2184_v50  ;;  %v2317_v58 = vsel %vm4073_vm7, %v3623_v51, 0.0  ;;  %v2318_v59 = vsel %vm46_vm1, %v2316_v53, 0.0 }
0x1ac8   :  { %v2319_v57 = vsel %vm46_vm1, %v2317_v58, 0.0 }
0x1ac9   :  { %v2187_v60 = vrot.slane %v2186_v55, 4  ;;  %v2320_v61 = vadd.f32 %v2319_v57, %v2318_v59  ;;  %v2505_v59 = vld [vmem:[#allocation3 + $0x130] sm:$0xff] }
0x1acb   :  { %v2188_v56 = vadd.f32 %v2187_v60, %v2186_v55  ;;  %v2321_v63 = vrot.slane %v2320_v61, 4  ;;  %v2814_v60 = vld [vmem:[#allocation3 + $0xe8] ss:$0 sm:$0xff] }
0x1acd   :  { %v2189_v2 = vrot.slane %v2188_v56, 2  ;;  %v2322_v6 = vadd.f32 %v2321_v63, %v2320_v61 }
0x1acf   :  { %v2190_v7 = vadd.f32 %v2189_v2, %v2188_v56  ;;  %v2323_v8 = vrot.slane %v2322_v6, 2  ;;  %v2508_v2 = vld [vmem:[#allocation3 + $0x148] sm:$0xff] }
0x1ad1   :  { %v2191_v11 = vrot.slane %v2190_v7, 1  ;;  %v2324_v12 = vadd.f32 %v2323_v8, %v2322_v6  ;;  %v3477_v6 = vpack.c.bf16 %v2508_v2, %v2507_v43 }
0x1ad3   :  { %v2192_v3 = vadd.f32 %v2191_v11, %v2190_v7  ;;  %v2325_v14 = vrot.slane %v2324_v12, 1  ;;  %v2816_v7 = vld [vmem:[#allocation3 + $0x138] ss:$0 sm:$0xff] }
0x1ad5   :  { %3624 = vrcp.f32 %v2192_v3  ;;  %v2326_v46 = vadd.f32 %v2325_v14, %v2324_v12  ;;  %v2510_v14 = vld [vmem:[#allocation3 + $0x158] sm:$0xff] }
0x1ad7   :  { %3626 = vrcp.f32 %v2326_v46  ;;  %v2818_v46 = vld [vmem:[#allocation3 + $0x150] ss:$0 sm:$0xff] }
0x1adf   :  { %v3625_v62 = vpop.eup %3624 }
0x1ae0   :  { %v2195_v17 = vmul.f32 %v3625_v62, %v2182_v47  ;;  %v2196_v18 = vmul.f32 %v3625_v62, %v2183_v49 }
0x1ae1   :  { %v3627_v19 = vpop.eup %3626 }
0x1ae2   :  { %3256 = vmatprep.mubr.msk.f32.mxu0 %vm46_vm1, %v2195_v17  ;;  %v2329_v20 = vmul.f32 %v3627_v19, %v2316_v53  ;;  %v2330_v21 = vmul.f32 %v3627_v19, %v2317_v58  ;;  %v2504_v58 = vld [vmem:[#allocation3 + $0x128] sm:$0xff] }
0x1ae3   :  { %3257 = vmatmul.mubr.msk.f32.vlgmr.msra.gmra.mrb[20].mxu0 %vm46_vm1, %v2196_v18  ;;  %v3474_v57 = vpack.c.bf16 %v2505_v59, %v2504_v58 }
0x1ae4   :  { %3260 = vmatpush3.msra.mxu0 %v4091_v16  ;;  %3261 = vmatprep.mubr.msk.f32.mxu0 %vm46_vm1, %v2329_v20  ;;  %v2502_v16 = vld [vmem:[#allocation3 + $0x118] sm:$0xff] }
0x1ae5   :  { %3470 = vmatprep.subr.bf16.mxu0 %v3661_v0  ;;  %v3471_v27 = vpack.c.bf16 %v2503_v32, %v2502_v16 }
0x1ae7   :  { %3262 = vmatmul.mubr.msk.f32.vlgmr.msra.gmra.mrb[22].mxu0 %vm46_vm1, %v2330_v21 }
0x1ae8   :  { %3283 = vmatprep.mubr.msk.f32.mxu0 %vm3662_vm0, %v3663_v1  ;;  %3472 = vmatpush3.bf16.msra.mxu0 %v3471_v27 }
0x1ae9   :  { %3473 = vmatprep.subr.bf16.mxu0 %v3661_v0 }
0x1aec   :  { %3475 = vmatpush3.bf16.msra.mxu0 %v3474_v57 }
0x1aed   :  { %3293 = vmatprep.subr.mxu0 %v3663_v1 }
0x1bb6   :  { %v3258_v29 = vpop.f32.mrb[20].mxu0 }
0x1bb7   :  { %v2287_v30 = vmul.f32 %v3258_v29, %v2283_v28  ;;  %v2269_v37 = vpop.f32.mrb[21].mxu0 }
0x1bb8   :  { %v2286_v31 = vmul.f32 %v2281_v34, %v2269_v37 }
0x1bb9   :  { %v2289_v4 = vsel %vm128_vm2, %v2287_v30, 0.0 }
0x1bba   :  { %v2288_v40 = vsel %vm128_vm2, %v2286_v31, 0.0  ;;  %v3263_v41 = vpop.f32.mrb[22].mxu0 }
0x1bbb   :  { %v2290_v9 = vadd.f32 %v2289_v4, %v2288_v40  ;;  %v2413_v33 = vmul.f32 %v3263_v41, %v2283_v28  ;;  %v2403_v35 = vpop.f32.mrb[23].mxu0 }
0x1bbc   :  { %v2412_v5 = vmul.f32 %v2403_v35, %v2281_v34 }
0x1bbd   :  { %v2291_v36 = vrot.slane %v2290_v9, 4  ;;  %v2415_v38 = vsel %vm128_vm2, %v2413_v33, 0.0 }
0x1bbe   :  { %v2414_v0 = vsel %vm128_vm2, %v2412_v5, 0.0 }
0x1bbf   :  { %v2292_v13 = vadd.f32 %v2291_v36, %v2290_v9  ;;  %v2416_v15 = vadd.f32 %v2415_v38, %v2414_v0 }
0x1bc1   :  { %v2293_v39 = vrot.slane %v2292_v13, 2  ;;  %v2417_v42 = vrot.slane %v2416_v15, 4 }
0x1bc3   :  { %v2294_v44 = vadd.f32 %v2293_v39, %v2292_v13  ;;  %v2418_v45 = vadd.f32 %v2417_v42, %v2416_v15 }
0x1bc5   :  { %v2295_v47 = vrot.slane %v2294_v44, 1  ;;  %v2419_v48 = vrot.slane %v2418_v45, 2 }
0x1bc7   :  { %v2420_v49 = vadd.f32 %v2419_v48, %v2418_v45  ;;  %v2296_v50 = vadd.f32 %v2295_v47, %v2294_v44 }
0x1bc9   :  { %v2421_v51 = vrot.slane %v2420_v49, 1  ;;  %v2298_v53 = vsel %vm2297_vm9, %v2296_v50, 0.0 }
0x1bcb   :  { %v2422_v52 = vadd.f32 %v2421_v51, %v2420_v49 }
0x1bcd   :  { %v2424_v55 = vsel %vm2423_vm10, %v2422_v52, %v2298_v53 }
0x1bce   :  { %3273 = vmatmul.mubr.msk.f32.vlgmr.msra.gmra.mrb[20].mxu1 %vm128_vm2, %v2424_v55 }
0x1bcf   :  { %3290 = vmatprep.mubr.msk.f32.mxu1 %vm3662_vm0, %v3663_v1  ;;  %3478 = vmatpush3.bf16.msra.mxu1 %v3477_v6 }
0x1ca1   :  { %v2498_v61 = vpop.f32.mrb[20].mxu1 }
0x1ca2   :  { %v2499_v56 = vadd.f32 %v2814_v60, %v2498_v61  ;;  %v3274_v63 = vpop.f32.mrb[21].mxu1 }
0x1ca4   :  { %3284 = vmatmul.mubr.msk.f32.vlgmr.msra.gmra.mrb[24].mxu0 %vm128_vm2, %v2499_v56 }
0x1ca5   :  { %3295 = vmatprep.mubr.msk.f32.mxu0 %vm3662_vm0, %v3663_v1  ;;  %3294 = vmatpush3.msra.mxu0 %v2510_v14  ;;  %v2820_v1 = vld [vmem:[#allocation3 + $0x160] ss:$0 sm:$0xff] }
0x1d77   :  { %v2585_v8 = vpop.f32.mrb[24].mxu0 }
0x1d78   :  { %v2586_v11 = vadd.f32 %v2816_v7, %v2585_v8  ;;  %v3285_v12 = vpop.f32.mrb[25].mxu0 }
0x1d7a   :  { %v2589_v3 = vmax.f32 %v2586_v11, 0.0 }
0x1d7c   :  { %3291 = vmatmul.mubr.msk.f32.vlgmr.msra.gmra.mrb[22].mxu1 %vm2594_vm11, %v2589_v3 }
0x1e4f   :  { %v2664_v62 = vpop.f32.mrb[22].mxu1 }
0x1e50   :  { %v2665_v17 = vadd.f32 %v2818_v46, %v2664_v62  ;;  %v3292_v18 = vpop.f32.mrb[23].mxu1 }
0x1e52   :  { %v2668_v19 = vmax.f32 %v2665_v17, 0.0 }
0x1e54   :  { %3296 = vmatmul.mubr.msk.f32.vlgmr.msra.gmra.mrb[26].mxu0 %vm46_vm1, %v2668_v19 }
0x1f27   :  { %v2742_v20 = vpop.f32.mrb[26].mxu0 }
0x1f28   :  { %v2743_v21 = vadd.f32 %v2820_v1, %v2742_v20  ;;  %v3297_v54 = vpop.f32.mrb[27].mxu0 }
0x1f2a   :  { %v2822_v22 = vmul.f32 -1.442695, %v2743_v21 }
0x1f2c   :  { %3628 = vpow2.f32 %v2822_v22 }
0x1f2d   :  { %3630 = vtanh.f32 %v2743_v21 }
0x1f36   :  { %v3629_v24 = vpop.eup %3628 }
0x1f37   :  { %v2753_v23 = vadd.f32 1.0, %v3629_v24  ;;  %v3631_v26 = vpop.eup %3630 }
0x1f38   :  { %v2758_v27 = vmul.f32 0.3, %v3631_v26 }
0x1f39   :  { %3632 = vrcp.f32 %v2753_v23 }
0x1f43   :  { %v3633_v16 = vpop.eup %3632 }
0x1f44   :  { %v2756_v32 = vmul.f32 0.5, %v3633_v16 }
0x1f46   :  { %v2759_v28 = vsel %vm2749_vm12, %v2756_v32, %v2758_v27 }
0x1f47   :  { %v2760_v29 = vsel %vm2748_vm13, %v2743_v21, %v2759_v28 }
0x1f48   :  { %2762 = vst.msk [vmem:[%s4151_s2] sm:$0x3] %vm2761_vm14, %v2760_v29 }
0x1f49   :  { %2767 = vsyncpa [#allocation4], 1 }

</bundles_post_ra>
